<compile_context>
chip_gen: v5e
topology: v5e:2x2
jax: 0.10.0
libtpu: 0.0.40
codegen_flags: <defaults>
</compile_context>

<pallas_src>
import functools

import jax
import jax.numpy as jnp
from jax.experimental import pallas as pl
from jax.experimental.pallas import tpu as pltpu

NEG_SLOPE = 0.01   # torch default leaky_relu slope
TAU = 0.5          # contrastive temperature


def _leaky_relu(x):
    return jnp.where(x > 0, x, NEG_SLOPE * x)


def _round_up(v, m):
    return -(-v // m) * m


def _vmem_limit_bytes():
    # Per-generation VMEM budget: ~96 MiB on v5e/v6e (128 MiB physical),
    # ~48 MiB on v7x (64 MiB physical).  Conservative fallback if query fails.
    cap = 64 * 1024 * 1024
    try:
        cap = int(getattr(pltpu.get_tpu_info(), "vmem_capacity_bytes", cap))
    except Exception:
        pass
    return int(min(cap * 3 // 4, 96 * 1024 * 1024))


# ---------------------------------------------------------------------------
# BlockSpec helpers
# ---------------------------------------------------------------------------
def _full_spec(shape):
    # Constant (grid-invariant) operand.
    # TODO(synk): mark these pipeline_mode=pl.Buffered(1) to drop the useless
    #             double-buffer once single-buffered inputs are supported.
    nd = len(shape)
    return pl.BlockSpec(shape, lambda *_g, _nd=nd: (0,) * _nd)


def _per_t_spec(shape3):
    return pl.BlockSpec(shape3, lambda t: (t, 0, 0))


# ---------------------------------------------------------------------------
# Kernel 1 (fused): node-feature embedding -> 2-layer GCN -> InfoNCE scalar
# ---------------------------------------------------------------------------
def _embed_gcn_kernel(feat_ref, adj_ref,
                      wbr_ref, bbr_ref, wl_ref, bl_ref,
                      w1_ref, b1_ref, w2_ref, b2_ref,
                      struct_ref, loss_ref, *, bp):
    f32 = jnp.float32
    bf16 = jnp.bfloat16

    feats = feat_ref[0]                                         # [N, Fsum] bf16
    # fused 4-branch embedding (block-diagonal weight) + leaky_relu
    emb = _leaky_relu(jnp.dot(feats, wbr_ref[...],
                              preferred_element_type=f32) + bbr_ref[...])
    # fused concat-linear: single K = 4*H4P matmul
    x = _leaky_relu(jnp.dot(emb.astype(bf16), wl_ref[...],
                            preferred_element_type=f32) + bl_ref[...])   # [N, HP]

    # 2-layer GCN propagation
    a = adj_ref[0]                                              # [N, N] bf16
    xw = jnp.dot(x.astype(bf16), w1_ref[...], preferred_element_type=f32) + b1_ref[...]
    h1 = _leaky_relu(jnp.dot(a, xw.astype(bf16), preferred_element_type=f32))
    hw = jnp.dot(h1.astype(bf16), w2_ref[...], preferred_element_type=f32) + b2_ref[...]
    struct = jnp.dot(a, hw.astype(bf16), preferred_element_type=f32)     # [N, HP]
    # only write back the rows the temporal layer consumes, in bf16
    struct_ref[0] = struct[:bp].astype(struct_ref.dtype)

    # InfoNCE contrastive term (diagonal positives), reduced to ONE scalar per
    # snapshot inside the kernel -> no O(N^2) sim writeback.
    z1 = h1
    z2 = _leaky_relu(xw)
    z1n = z1 * jax.lax.rsqrt(jnp.sum(z1 * z1, axis=-1, keepdims=True) + 1e-8)
    z2n = z2 * jax.lax.rsqrt(jnp.sum(z2 * z2, axis=-1, keepdims=True) + 1e-8)
    sim = jax.lax.dot_general(z1n.astype(bf16), z2n.astype(bf16),
                              (((1,), (1,)), ((), ())),
                              preferred_element_type=f32) * (1.0 / TAU)   # [N, N]
    m = jnp.max(sim, axis=-1, keepdims=True)
    lse = m + jnp.log(jnp.sum(jnp.exp(sim - m), axis=-1, keepdims=True))  # [N, 1]
    # diagonal positives via direct row-wise dot (no eye mask / N^2 select)
    diag = jnp.sum(z1n * z2n, axis=-1, keepdims=True) * (1.0 / TAU)       # [N, 1]
    n = sim.shape[0]
    loss = jnp.sum(lse - diag, axis=0, keepdims=True) * (1.0 / n)         # (1, 1)
    loss_ref[0] = jnp.broadcast_to(loss, (1, 128))


def fused_embed_structural(feats, adj, kp, batch_size):
    T, N, Fsum = feats.shape
    HP = kp["w1"].shape[0]
    BP = _round_up(batch_size, 8)
    if BP > N:
        BP = N
    kernel = functools.partial(_embed_gcn_kernel, bp=BP)
    in_arrays = (feats, adj,
                 kp["wbr"], kp["bbr"], kp["wl"], kp["bl"],
                 kp["w1"], kp["b1"], kp["w2"], kp["b2"])
    in_specs = ([_per_t_spec((1, N, Fsum)), _per_t_spec((1, N, N))]
                + [_full_spec(a.shape) for a in in_arrays[2:]])
    return pl.pallas_call(
        kernel,
        out_shape=(jax.ShapeDtypeStruct((T, BP, HP), jnp.bfloat16),
                   jax.ShapeDtypeStruct((T, 1, 128), jnp.float32)),
        grid=(T,),
        in_specs=in_specs,
        out_specs=(_per_t_spec((1, BP, HP)), _per_t_spec((1, 1, 128))),
        compiler_params=pltpu.CompilerParams(
            dimension_semantics=("parallel",),
            vmem_limit_bytes=_vmem_limit_bytes()),
    )(*in_arrays)


# ---------------------------------------------------------------------------
# Kernel 2: GraphTemporalLayer: positional encodings + masked multi-head
#           temporal self-attention + residual.  Grid = (batch-parallel, heads).
# ---------------------------------------------------------------------------
def _temporal_kernel(struct_ref, cc_ref, blr_ref, exist_ref, causal_ref,
                     wcc_ref, wbl_ref, bpe_ref,
                     wq_ref, wk_ref, wv_ref, wo_ref, out_ref, x_scratch):
    f32 = jnp.float32
    bf16 = jnp.bfloat16
    head = pl.program_id(1)
    tb, T, HP = x_scratch.shape

    # positional encodings + residual base: computed ONCE per batch tile
    @pl.when(head == 0)
    def _():
        pe = (cc_ref[...] * wcc_ref[...].reshape(1, 1, HP)
              + blr_ref[...] * wbl_ref[...].reshape(1, 1, HP)
              + bpe_ref[...].reshape(1, 1, HP))
        x = struct_ref[...].astype(f32) + pe                    # [tb, T, HP]
        x_scratch[...] = x
        out_ref[...] = x                                        # residual term

    # per-head projections (1/sqrt(dh) already folded into wq host-side)
    x2 = x_scratch[...].reshape(tb * T, HP).astype(bf16)
    q = jnp.dot(x2, wq_ref[0], preferred_element_type=f32).reshape(tb, T, -1)
    k = jnp.dot(x2, wk_ref[0], preferred_element_type=f32).reshape(tb, T, -1)
    v = jnp.dot(x2, wv_ref[0], preferred_element_type=f32).reshape(tb, T, -1)

    s = jnp.einsum('bqd,bkd->bqk', q.astype(bf16), k.astype(bf16),
                   preferred_element_type=f32)                  # [tb, T, T]
    key_ok = exist_ref[...][:, None, :] > 0.5                   # [tb, 1, T]
    causal_ok = causal_ref[...][None, :, :] > 0.5               # [1, T, T]
    allowed = jnp.logical_and(key_ok, causal_ok)                # [tb, T, T]
    s = jnp.where(allowed, s, -1e9)
    s = s - jnp.max(s, axis=-1, keepdims=True)
    e = jnp.exp(s)
    attn = e * pl.reciprocal(jnp.sum(e, axis=-1, keepdims=True), approx=True)
    # if every key of a query row is masked, attend to nothing (residual only)
    any_ok = jnp.max(jnp.where(allowed, 1.0, 0.0), axis=-1, keepdims=True) > 0.5
    attn = jnp.where(any_ok, attn, 0.0)

    ctx = jnp.einsum('bqk,bkd->bqd', attn.astype(bf16), v.astype(bf16),
                     preferred_element_type=f32)                # [tb, T, DHP]
    contrib = jnp.dot(ctx.reshape(tb * T, -1).astype(bf16), wo_ref[0],
                      preferred_element_type=f32).reshape(tb, T, HP)
    out_ref[...] = out_ref[...] + contrib                       # accumulate over heads


def _pick_tb(batch):
    # largest divisor of B (<=256) that keeps the exist block sublane-legal
    best = batch
    for cand in range(min(batch, 256), 0, -1):
        if batch % cand == 0 and (cand % 8 == 0 or cand == batch):
            best = cand
            break
    return best


def temporal_layer(struct_b, cc_b, bl_b, exist_b, causal, kp):
    B, T, HP = struct_b.shape
    n_heads = kp["wqh"].shape[0]
    DHP = kp["wqh"].shape[2]
    tb = _pick_tb(B)

    def batch_spec(shape):
        return pl.BlockSpec(shape, lambda i, h: (i, 0, 0))

    def head_spec(shape):
        return pl.BlockSpec(shape, lambda i, h: (h, 0, 0))

    def const_spec(shape):
        nd = len(shape)
        return pl.BlockSpec(shape, lambda i, h, _nd=nd: (0,) * _nd)

    args = (struct_b, cc_b, bl_b, exist_b, causal,
            kp["wcc"], kp["wbl"], kp["bpe"],
            kp["wqh"], kp["wkh"], kp["wvh"], kp["woh"])
    in_specs = [
        batch_spec((tb, T, HP)), batch_spec((tb, T, 1)), batch_spec((tb, T, 1)),
        pl.BlockSpec((tb, T), lambda i, h: (i, 0)),
        const_spec((T, T)),
        const_spec(kp["wcc"].shape), const_spec(kp["wbl"].shape),
        const_spec(kp["bpe"].shape),
        head_spec((1, HP, DHP)), head_spec((1, HP, DHP)), head_spec((1, HP, DHP)),
        head_spec((1, DHP, HP)),
    ]
    return pl.pallas_call(
        _temporal_kernel,
        out_shape=jax.ShapeDtypeStruct((B, T, HP), jnp.float32),
        grid=(B // tb, n_heads),
        in_specs=in_specs,
        out_specs=batch_spec((tb, T, HP)),
        scratch_shapes=[pltpu.VMEM((tb, T, HP), jnp.float32)],
        compiler_params=pltpu.CompilerParams(
            dimension_semantics=("parallel", "arbitrary"),
            vmem_limit_bytes=_vmem_limit_bytes()),
    )(*args)


# ---------------------------------------------------------------------------
# Glue (plain JAX): adjacency build (one-hot matmul, no scatter), orchestration
# ---------------------------------------------------------------------------
def build_normalized_adj(edge_index, num_nodes):
    src, dst = edge_index[0], edge_index[1]
    oh_src = jax.nn.one_hot(src, num_nodes, dtype=jnp.float32)     # [E, N]
    oh_dst = jax.nn.one_hot(dst, num_nodes, dtype=jnp.float32)     # [E, N]
    a = oh_dst.T @ oh_src                                          # edge counts
    a = jnp.minimum(a, 1.0) + jnp.eye(num_nodes, dtype=jnp.float32)
    a = jnp.minimum(a, 1.0)
    deg = jnp.sum(a, axis=1, keepdims=True)
    return a / jnp.maximum(deg, 1.0)


def bot_sthcl_forward(params, kparams, des, tweet, num_prop, cat_prop, edge_index,
                      clustering_coeff, bidir_ratio, exist_nodes,
                      current_batch_size):
    T, N, _ = des.shape
    B = current_batch_size
    H = params["hidden_dim"]

    adj = jax.vmap(lambda ei: build_normalized_adj(ei, N))(edge_index)
    adj = adj.astype(jnp.bfloat16)                                         # [T,N,N]
    # features concatenated + bf16 host-side: one fused branch matmul in-kernel
    feats = jnp.concatenate([des, tweet, num_prop, cat_prop],
                            axis=-1).astype(jnp.bfloat16)                  # [T,N,Fsum]

    # fused embedding + GCN + per-snapshot contrastive scalar
    struct_out, loss_blk = fused_embed_structural(feats, adj, kparams, B)  # [T,BP,HP] bf16
    total_contrastive_loss = jnp.sum(loss_blk[:, 0, 0])

    # stack first `current_batch_size` nodes across time -> [B, T, *]
    struct_b = jnp.transpose(struct_out[:, :B, :], (1, 0, 2))              # [B, T, HP]
    cc_b = jnp.transpose(clustering_coeff[:, :B, :], (1, 0, 2))            # [B, T, 1]
    bl_b = jnp.transpose(bidir_ratio[:, :B, :], (1, 0, 2))                 # [B, T, 1]
    exist_b = jnp.transpose(exist_nodes, (1, 0))[:B]                       # [B, T]
    causal = jnp.tril(jnp.ones((T, T), jnp.float32))

    temporal_out = temporal_layer(struct_b, cc_b, bl_b, exist_b, causal, kparams)
    temporal_out = temporal_out[:, :, :H]                                  # drop lane padding

    weight = jax.nn.softplus(params["contrastive_loss_weight"])
    return temporal_out, total_contrastive_loss * weight


# ---------------------------------------------------------------------------
# Parameters: logical init + lane-dense / bf16 kernel layout
# ---------------------------------------------------------------------------
def init_params(key, hidden_dim, des_dim, tweet_dim, num_dim, cat_dim, n_heads):
    h4 = hidden_dim // 4
    ks = jax.random.split(key, 16)

    def w(k, shape):
        return jax.random.normal(k, shape, jnp.float32) * 0.1

    z = lambda shape: jnp.zeros(shape, jnp.float32)
    return dict(
        hidden_dim=hidden_dim, n_heads_temporal=n_heads,
        wd=w(ks[0], (des_dim, h4)), bd=z((1, h4)),
        wt=w(ks[1], (tweet_dim, h4)), bt=z((1, h4)),
        wn=w(ks[2], (num_dim, h4)), bn=z((1, h4)),
        wc=w(ks[3], (cat_dim, h4)), bc=z((1, h4)),
        wl=w(ks[4], (hidden_dim, hidden_dim)), bl=z((1, hidden_dim)),
        w1=w(ks[5], (hidden_dim, hidden_dim)), b1=z((1, hidden_dim)),
        w2=w(ks[6], (hidden_dim, hidden_dim)), b2=z((1, hidden_dim)),
        wcc=w(ks[7], (1, hidden_dim)), bcc=z((1, hidden_dim)),
        wbl=w(ks[8], (1, hidden_dim)), bbl=z((1, hidden_dim)),
        wq=w(ks[9], (hidden_dim, hidden_dim)),
        wk=w(ks[10], (hidden_dim, hidden_dim)),
        wv=w(ks[11], (hidden_dim, hidden_dim)),
        wo=w(ks[12], (hidden_dim, hidden_dim)),
        contrastive_loss_weight=jnp.float32(1.0),
    )


def _pad2(w, rows, cols):
    out = jnp.zeros((rows, cols), w.dtype)
    return out.at[:w.shape[0], :w.shape[1]].set(w)


def prepare_kernel_params(p):
    """Zero-pad weights to lane-dense (128-multiple) layouts and cast matmul
    operands to bf16.  Padding columns/rows are zero, so the logical forward
    values are unchanged; the temporal output is sliced back to H outside."""
    H = p["hidden_dim"]
    nh = p["n_heads_temporal"]
    h4 = p["wd"].shape[1]
    dh = H // nh
    HP = _round_up(H, 128)        # padded hidden dim (NOT nh*128)
    DHP = _round_up(dh, 128)      # padded per-head dim, only for Q/K/V/O slabs
    H4P = _round_up(h4, 128)      # padded per-branch embedding dim
    bf16 = jnp.bfloat16
    f32 = jnp.float32

    kp = {}
    # fused 4-branch embedding: block-diagonal (Fsum, 4*H4P) weight + bias row
    branch_ws = [p["wd"], p["wt"], p["wn"], p["wc"]]
    branch_bs = [p["bd"], p["bt"], p["bn"], p["bc"]]
    fsum = sum(w.shape[0] for w in branch_ws)
    wbr = jnp.zeros((fsum, 4 * H4P), f32)
    bbr = jnp.zeros((1, 4 * H4P), f32)
    row = 0
    for i, (w, b) in enumerate(zip(branch_ws, branch_bs)):
        wbr = wbr.at[row:row + w.shape[0], i * H4P:i * H4P + h4].set(w)
        bbr = bbr.at[:, i * H4P:i * H4P + h4].set(b)
        row += w.shape[0]
    kp["wbr"] = wbr.astype(bf16)
    kp["bbr"] = bbr

    # fused concat-linear: single (4*H4P, HP) operand
    wl = jnp.zeros((4 * H4P, HP), f32)
    for i in range(4):
        wl = wl.at[i * H4P:i * H4P + h4, :H].set(p["wl"][i * h4:(i + 1) * h4, :])
    kp["wl"] = wl.astype(bf16)
    kp["bl"] = _pad2(p["bl"], 1, HP)

    # GCN
    kp["w1"] = _pad2(p["w1"], HP, HP).astype(bf16)
    kp["b1"] = _pad2(p["b1"], 1, HP)
    kp["w2"] = _pad2(p["w2"], HP, HP).astype(bf16)
    kp["b2"] = _pad2(p["b2"], 1, HP)

    # positional encodings (elementwise -> f32); bcc+bbl pre-summed
    kp["wcc"] = _pad2(p["wcc"], 1, HP)
    kp["wbl"] = _pad2(p["wbl"], 1, HP)
    kp["bpe"] = _pad2(p["bcc"] + p["bbl"], 1, HP)

    # attention weights, head-stacked; 1/sqrt(dh) folded into wq host-side
    scale = 1.0 / float(dh) ** 0.5

    def stack_cols(w):
        return jnp.stack([_pad2(w[:, hh * dh:(hh + 1) * dh], HP, DHP)
                          for hh in range(nh)]).astype(bf16)

    kp["wqh"] = stack_cols(p["wq"] * scale)
    kp["wkh"] = stack_cols(p["wk"])
    kp["wvh"] = stack_cols(p["wv"])
    kp["woh"] = jnp.stack([_pad2(p["wo"][hh * dh:(hh + 1) * dh, :], DHP, HP)
                           for hh in range(nh)]).astype(bf16)
    # TODO(synk): on v7x consider fp8 (e4m3) storage for w1/w2 and Q/K/V/O slabs.
    return kp


if __name__ == "__main__":
    T, N, B = 3, 32, 16                 # window_size, nodes/snapshot, batch
    DES, TWT, NUM, CAT, H = 16, 16, 8, 8, 32
    N_HEADS = 2
    E = 64

    key = jax.random.PRNGKey(0)
    kp_key, *ks = jax.random.split(key, 10)
    params = init_params(kp_key, H, DES, TWT, NUM, CAT, N_HEADS)
    kparams = prepare_kernel_params(params)

    des = jax.random.normal(ks[0], (T, N, DES), jnp.float32)
    tweet = jax.random.normal(ks[1], (T, N, TWT), jnp.float32)
    num_prop = jax.random.normal(ks[2], (T, N, NUM), jnp.float32)
    cat_prop = jax.random.normal(ks[3], (T, N, CAT), jnp.float32)
    src = jax.random.randint(ks[4], (T, E), 0, N)
    dst = jax.random.randint(ks[5], (T, E), 0, N)
    edge_index = jnp.stack([src, dst], axis=1)                 # [T, 2, E]
    clustering_coeff = jax.random.uniform(ks[6], (T, N, 1), jnp.float32)
    bidir_ratio = jax.random.uniform(ks[7], (T, N, 1), jnp.float32)
    exist_nodes = (jax.random.uniform(ks[8], (T, N)) > 0.1).astype(jnp.float32)

    temporal_out, weighted_loss = bot_sthcl_forward(
        params, kparams, des, tweet, num_prop, cat_prop, edge_index,
        clustering_coeff, bidir_ratio, exist_nodes, B)
    jax.block_until_ready((temporal_out, weighted_loss))

    assert temporal_out.shape == (B, T, H)
    assert not bool(jnp.any(jnp.isnan(temporal_out)))
    assert not bool(jnp.isnan(weighted_loss))
    print("KERNEL_OK")
</pallas_src>

<mosaic_0001>
module attributes {stable_mosaic.version = 11 : i64} {
  func.func @_embed_gcn_kernel(%arg0: i32, %arg1: memref<1x32x48xbf16, #tpu.memory_space<vmem>>, %arg2: memref<1x32x32xbf16, #tpu.memory_space<vmem>>, %arg3: memref<48x512xbf16, #tpu.memory_space<vmem>>, %arg4: memref<1x512xf32, #tpu.memory_space<vmem>>, %arg5: memref<512x128xbf16, #tpu.memory_space<vmem>>, %arg6: memref<1x128xf32, #tpu.memory_space<vmem>>, %arg7: memref<128x128xbf16, #tpu.memory_space<vmem>>, %arg8: memref<1x128xf32, #tpu.memory_space<vmem>>, %arg9: memref<128x128xbf16, #tpu.memory_space<vmem>>, %arg10: memref<1x128xf32, #tpu.memory_space<vmem>>, %arg11: memref<1x16x128xbf16, #tpu.memory_space<vmem>>, %arg12: memref<1x1x128xf32, #tpu.memory_space<vmem>>) attributes {dimension_semantics = [#tpu.dimension_semantics<parallel>], iteration_bounds = array<i64: 3>, scalar_prefetch = 0 : i64, scratch_operands = 0 : i64, tpu.core_type = #tpu.core_type<tc>, window_params = [{transform_indices = @transform_0, window_bounds = array<i64: 1, 32, 48>}, {transform_indices = @transform_1, window_bounds = array<i64: 1, 32, 32>}, {pipeline_mode = #tpu.pipeline_mode<synchronous>, transform_indices = @transform_2, window_bounds = array<i64: 48, 512>}, {pipeline_mode = #tpu.pipeline_mode<synchronous>, transform_indices = @transform_3, window_bounds = array<i64: 1, 512>}, {pipeline_mode = #tpu.pipeline_mode<synchronous>, transform_indices = @transform_4, window_bounds = array<i64: 512, 128>}, {pipeline_mode = #tpu.pipeline_mode<synchronous>, transform_indices = @transform_5, window_bounds = array<i64: 1, 128>}, {pipeline_mode = #tpu.pipeline_mode<synchronous>, transform_indices = @transform_6, window_bounds = array<i64: 128, 128>}, {pipeline_mode = #tpu.pipeline_mode<synchronous>, transform_indices = @transform_7, window_bounds = array<i64: 1, 128>}, {pipeline_mode = #tpu.pipeline_mode<synchronous>, transform_indices = @transform_8, window_bounds = array<i64: 128, 128>}, {pipeline_mode = #tpu.pipeline_mode<synchronous>, transform_indices = @transform_9, window_bounds = array<i64: 1, 128>}, {transform_indices = @transform_10, window_bounds = array<i64: 1, 16, 128>}, {transform_indices = @transform_11, window_bounds = array<i64: 1, 1, 128>}]} {
    %c0 = arith.constant 0 : index
    %c0_0 = arith.constant 0 : index
    %c0_1 = arith.constant 0 : index
    %0 = vector.load %arg1[%c0, %c0_0, %c0_1] : memref<1x32x48xbf16, #tpu.memory_space<vmem>>, vector<1x32x48xbf16>
    %1 = vector.shape_cast %0 : vector<1x32x48xbf16> to vector<32x48xbf16>
    %c0_2 = arith.constant 0 : index
    %c0_3 = arith.constant 0 : index
    %2 = vector.load %arg3[%c0_2, %c0_3] : memref<48x512xbf16, #tpu.memory_space<vmem>>, vector<48x512xbf16>
    %cst = arith.constant dense<0.000000e+00> : vector<32x512xf32>
    %3 = tpu.matmul %1, %2, %cst {dimension_numbers = #tpu.dot_dimension_numbers<[1], [0], [0], [1], [0, 0, 1, 1], [], []>} : vector<32x48xbf16>, vector<48x512xbf16>, vector<32x512xf32> -> vector<32x512xf32>
    %c0_4 = arith.constant 0 : index
    %c0_5 = arith.constant 0 : index
    %4 = vector.load %arg4[%c0_4, %c0_5] : memref<1x512xf32, #tpu.memory_space<vmem>>, vector<1x512xf32>
    %5 = vector.broadcast %4 : vector<1x512xf32> to vector<32x512xf32>
    %6 = arith.addf %3, %5 : vector<32x512xf32>
    %cst_6 = arith.constant 0.000000e+00 : f32
    %7 = vector.broadcast %cst_6 : f32 to vector<32x512xf32>
    %8 = arith.cmpf ogt, %6, %7 : vector<32x512xf32>
    %cst_7 = arith.constant 0.00999999977 : f32
    %9 = vector.broadcast %cst_7 : f32 to vector<32x512xf32>
    %10 = arith.mulf %9, %6 : vector<32x512xf32>
    %11 = arith.select %8, %6, %10 : vector<32x512xi1>, vector<32x512xf32>
    %12 = arith.truncf %11 : vector<32x512xf32> to vector<32x512xbf16>
    %c0_8 = arith.constant 0 : index
    %c0_9 = arith.constant 0 : index
    %13 = vector.load %arg5[%c0_8, %c0_9] : memref<512x128xbf16, #tpu.memory_space<vmem>>, vector<512x128xbf16>
    %cst_10 = arith.constant dense<0.000000e+00> : vector<32x128xf32>
    %14 = tpu.matmul %12, %13, %cst_10 {dimension_numbers = #tpu.dot_dimension_numbers<[1], [0], [0], [1], [0, 0, 1, 1], [], []>} : vector<32x512xbf16>, vector<512x128xbf16>, vector<32x128xf32> -> vector<32x128xf32>
    %c0_11 = arith.constant 0 : index
    %c0_12 = arith.constant 0 : index
    %15 = vector.load %arg6[%c0_11, %c0_12] : memref<1x128xf32, #tpu.memory_space<vmem>>, vector<1x128xf32>
    %16 = vector.broadcast %15 : vector<1x128xf32> to vector<32x128xf32>
    %17 = arith.addf %14, %16 : vector<32x128xf32>
    %cst_13 = arith.constant 0.000000e+00 : f32
    %18 = vector.broadcast %cst_13 : f32 to vector<32x128xf32>
    %19 = arith.cmpf ogt, %17, %18 : vector<32x128xf32>
    %cst_14 = arith.constant 0.00999999977 : f32
    %20 = vector.broadcast %cst_14 : f32 to vector<32x128xf32>
    %21 = arith.mulf %20, %17 : vector<32x128xf32>
    %22 = arith.select %19, %17, %21 : vector<32x128xi1>, vector<32x128xf32>
    %c0_15 = arith.constant 0 : index
    %c0_16 = arith.constant 0 : index
    %c0_17 = arith.constant 0 : index
    %23 = vector.load %arg2[%c0_15, %c0_16, %c0_17] : memref<1x32x32xbf16, #tpu.memory_space<vmem>>, vector<1x32x32xbf16>
    %24 = vector.shape_cast %23 : vector<1x32x32xbf16> to vector<32x32xbf16>
    %25 = arith.truncf %22 : vector<32x128xf32> to vector<32x128xbf16>
    %c0_18 = arith.constant 0 : index
    %c0_19 = arith.constant 0 : index
    %26 = vector.load %arg7[%c0_18, %c0_19] : memref<128x128xbf16, #tpu.memory_space<vmem>>, vector<128x128xbf16>
    %cst_20 = arith.constant dense<0.000000e+00> : vector<32x128xf32>
    %27 = tpu.matmul %25, %26, %cst_20 {dimension_numbers = #tpu.dot_dimension_numbers<[1], [0], [0], [1], [0, 0, 1, 1], [], []>} : vector<32x128xbf16>, vector<128x128xbf16>, vector<32x128xf32> -> vector<32x128xf32>
    %c0_21 = arith.constant 0 : index
    %c0_22 = arith.constant 0 : index
    %28 = vector.load %arg8[%c0_21, %c0_22] : memref<1x128xf32, #tpu.memory_space<vmem>>, vector<1x128xf32>
    %29 = vector.broadcast %28 : vector<1x128xf32> to vector<32x128xf32>
    %30 = arith.addf %27, %29 : vector<32x128xf32>
    %31 = arith.truncf %30 : vector<32x128xf32> to vector<32x128xbf16>
    %cst_23 = arith.constant dense<0.000000e+00> : vector<32x128xf32>
    %32 = tpu.matmul %24, %31, %cst_23 {dimension_numbers = #tpu.dot_dimension_numbers<[1], [0], [0], [1], [0, 0, 1, 1], [], []>} : vector<32x32xbf16>, vector<32x128xbf16>, vector<32x128xf32> -> vector<32x128xf32>
    %cst_24 = arith.constant 0.000000e+00 : f32
    %33 = vector.broadcast %cst_24 : f32 to vector<32x128xf32>
    %34 = arith.cmpf ogt, %32, %33 : vector<32x128xf32>
    %cst_25 = arith.constant 0.00999999977 : f32
    %35 = vector.broadcast %cst_25 : f32 to vector<32x128xf32>
    %36 = arith.mulf %35, %32 : vector<32x128xf32>
    %37 = arith.select %34, %32, %36 : vector<32x128xi1>, vector<32x128xf32>
    %38 = arith.truncf %37 : vector<32x128xf32> to vector<32x128xbf16>
    %c0_26 = arith.constant 0 : index
    %c0_27 = arith.constant 0 : index
    %39 = vector.load %arg9[%c0_26, %c0_27] : memref<128x128xbf16, #tpu.memory_space<vmem>>, vector<128x128xbf16>
    %cst_28 = arith.constant dense<0.000000e+00> : vector<32x128xf32>
    %40 = tpu.matmul %38, %39, %cst_28 {dimension_numbers = #tpu.dot_dimension_numbers<[1], [0], [0], [1], [0, 0, 1, 1], [], []>} : vector<32x128xbf16>, vector<128x128xbf16>, vector<32x128xf32> -> vector<32x128xf32>
    %c0_29 = arith.constant 0 : index
    %c0_30 = arith.constant 0 : index
    %41 = vector.load %arg10[%c0_29, %c0_30] : memref<1x128xf32, #tpu.memory_space<vmem>>, vector<1x128xf32>
    %42 = vector.broadcast %41 : vector<1x128xf32> to vector<32x128xf32>
    %43 = arith.addf %40, %42 : vector<32x128xf32>
    %44 = arith.truncf %43 : vector<32x128xf32> to vector<32x128xbf16>
    %cst_31 = arith.constant dense<0.000000e+00> : vector<32x128xf32>
    %45 = tpu.matmul %24, %44, %cst_31 {dimension_numbers = #tpu.dot_dimension_numbers<[1], [0], [0], [1], [0, 0, 1, 1], [], []>} : vector<32x32xbf16>, vector<32x128xbf16>, vector<32x128xf32> -> vector<32x128xf32>
    %46 = vector.extract_strided_slice %45 {offsets = [0, 0], sizes = [16, 128], strides = [1, 1]} : vector<32x128xf32> to vector<16x128xf32>
    %47 = arith.truncf %46 : vector<16x128xf32> to vector<16x128xbf16>
    %c0_32 = arith.constant 0 : index
    %c0_33 = arith.constant 0 : index
    %c0_34 = arith.constant 0 : index
    %48 = vector.load %arg11[%c0_32, %c0_33, %c0_34] : memref<1x16x128xbf16, #tpu.memory_space<vmem>>, vector<1x16x128xbf16>
    %49 = vector.shape_cast %48 : vector<1x16x128xbf16> to vector<16x128xbf16>
    %50 = vector.shape_cast %47 : vector<16x128xbf16> to vector<1x16x128xbf16>
    tpu.vector_store %arg11[%c0_32, %c0_33, %c0_34], %50 {strides = array<i32>} : memref<1x16x128xbf16, #tpu.memory_space<vmem>>, vector<1x16x128xbf16>,
    %cst_35 = arith.constant 0.000000e+00 : f32
    %51 = vector.broadcast %cst_35 : f32 to vector<32x128xf32>
    %52 = arith.cmpf ogt, %30, %51 : vector<32x128xf32>
    %cst_36 = arith.constant 0.00999999977 : f32
    %53 = vector.broadcast %cst_36 : f32 to vector<32x128xf32>
    %54 = arith.mulf %53, %30 : vector<32x128xf32>
    %55 = arith.select %52, %30, %54 : vector<32x128xi1>, vector<32x128xf32>
    %56 = arith.mulf %37, %37 : vector<32x128xf32>
    %cst_37 = arith.constant dense<0.000000e+00> : vector<32xf32>
    %57 = vector.multi_reduction <add>, %56, %cst_37 [1] : vector<32x128xf32> to vector<32xf32>
    %58 = vector.shape_cast %57 : vector<32xf32> to vector<32x1xf32>
    %cst_38 = arith.constant 9.99999993E-9 : f32
    %59 = vector.broadcast %cst_38 : f32 to vector<32x1xf32>
    %60 = arith.addf %58, %59 : vector<32x1xf32>
    %61 = math.rsqrt %60 : vector<32x1xf32>
    %62 = vector.broadcast %61 : vector<32x1xf32> to vector<32x128xf32>
    %63 = arith.mulf %37, %62 : vector<32x128xf32>
    %64 = arith.mulf %55, %55 : vector<32x128xf32>
    %cst_39 = arith.constant dense<0.000000e+00> : vector<32xf32>
    %65 = vector.multi_reduction <add>, %64, %cst_39 [1] : vector<32x128xf32> to vector<32xf32>
    %66 = vector.shape_cast %65 : vector<32xf32> to vector<32x1xf32>
    %cst_40 = arith.constant 9.99999993E-9 : f32
    %67 = vector.broadcast %cst_40 : f32 to vector<32x1xf32>
    %68 = arith.addf %66, %67 : vector<32x1xf32>
    %69 = math.rsqrt %68 : vector<32x1xf32>
    %70 = vector.broadcast %69 : vector<32x1xf32> to vector<32x128xf32>
    %71 = arith.mulf %55, %70 : vector<32x128xf32>
    %72 = arith.truncf %63 : vector<32x128xf32> to vector<32x128xbf16>
    %73 = arith.truncf %71 : vector<32x128xf32> to vector<32x128xbf16>
    %cst_41 = arith.constant dense<0.000000e+00> : vector<32x32xf32>
    %74 = tpu.matmul %72, %73, %cst_41 {dimension_numbers = #tpu.dot_dimension_numbers<[1], [1], [0], [0], [0, 0, 1, 0], [], []>} : vector<32x128xbf16>, vector<32x128xbf16>, vector<32x32xf32> -> vector<32x32xf32>
    %cst_42 = arith.constant 2.000000e+00 : f32
    %75 = vector.broadcast %cst_42 : f32 to vector<32x32xf32>
    %76 = arith.mulf %74, %75 : vector<32x32xf32>
    %cst_43 = arith.constant dense<0xFF800000> : vector<32xf32>
    %77 = vector.multi_reduction <maximumf>, %76, %cst_43 [1] : vector<32x32xf32> to vector<32xf32>
    %78 = vector.shape_cast %77 : vector<32xf32> to vector<32x1xf32>
    %79 = vector.broadcast %78 : vector<32x1xf32> to vector<32x32xf32>
    %80 = arith.subf %76, %79 : vector<32x32xf32>
    %81 = math.exp %80 : vector<32x32xf32>
    %cst_44 = arith.constant dense<0.000000e+00> : vector<32xf32>
    %82 = vector.multi_reduction <add>, %81, %cst_44 [1] : vector<32x32xf32> to vector<32xf32>
    %83 = vector.shape_cast %82 : vector<32xf32> to vector<32x1xf32>
    %84 = math.log %83 : vector<32x1xf32>
    %85 = arith.addf %78, %84 : vector<32x1xf32>
    %86 = arith.mulf %63, %71 : vector<32x128xf32>
    %cst_45 = arith.constant dense<0.000000e+00> : vector<32xf32>
    %87 = vector.multi_reduction <add>, %86, %cst_45 [1] : vector<32x128xf32> to vector<32xf32>
    %88 = vector.shape_cast %87 : vector<32xf32> to vector<32x1xf32>
    %cst_46 = arith.constant 2.000000e+00 : f32
    %89 = vector.broadcast %cst_46 : f32 to vector<32x1xf32>
    %90 = arith.mulf %88, %89 : vector<32x1xf32>
    %91 = arith.subf %85, %90 : vector<32x1xf32>
    %cst_47 = arith.constant dense<0.000000e+00> : vector<1xf32>
    %92 = vector.multi_reduction <add>, %91, %cst_47 [0] : vector<32x1xf32> to vector<1xf32>
    %93 = vector.shape_cast %92 : vector<1xf32> to vector<1x1xf32>
    %cst_48 = arith.constant 3.125000e-02 : f32
    %94 = vector.broadcast %cst_48 : f32 to vector<1x1xf32>
    %95 = arith.mulf %93, %94 : vector<1x1xf32>
    %96 = vector.shape_cast %95 : vector<1x1xf32> to vector<1x1xf32>
    %97 = vector.broadcast %96 : vector<1x1xf32> to vector<1x128xf32>
    %c0_49 = arith.constant 0 : index
    %c0_50 = arith.constant 0 : index
    %c0_51 = arith.constant 0 : index
    %98 = vector.load %arg12[%c0_49, %c0_50, %c0_51] : memref<1x1x128xf32, #tpu.memory_space<vmem>>, vector<1x1x128xf32>
    %99 = vector.shape_cast %98 : vector<1x1x128xf32> to vector<1x128xf32>
    %100 = vector.shape_cast %97 : vector<1x128xf32> to vector<1x1x128xf32>
    tpu.vector_store %arg12[%c0_49, %c0_50, %c0_51], %100 {strides = array<i32>} : memref<1x1x128xf32, #tpu.memory_space<vmem>>, vector<1x1x128xf32>,
    return
  }
  func.func @transform_0(%arg0: i32) -> (i32, i32, i32) {
    %c0_i32 = arith.constant 0 : i32
    %c0_i32_0 = arith.constant 0 : i32
    %c0_i32_1 = arith.constant 0 : i32
    return %arg0, %c0_i32, %c0_i32_0 : i32, i32, i32
  }
  func.func @transform_1(%arg0: i32) -> (i32, i32, i32) {
    %c0_i32 = arith.constant 0 : i32
    %c0_i32_0 = arith.constant 0 : i32
    %c0_i32_1 = arith.constant 0 : i32
    return %arg0, %c0_i32, %c0_i32_0 : i32, i32, i32
  }
  func.func @transform_2(%arg0: i32) -> (i32, i32) {
    %c0_i32 = arith.constant 0 : i32
    %c0_i32_0 = arith.constant 0 : i32
    %c0_i32_1 = arith.constant 0 : i32
    return %c0_i32, %c0_i32_0 : i32, i32
  }
  func.func @transform_3(%arg0: i32) -> (i32, i32) {
    %c0_i32 = arith.constant 0 : i32
    %c0_i32_0 = arith.constant 0 : i32
    %c0_i32_1 = arith.constant 0 : i32
    return %c0_i32, %c0_i32_0 : i32, i32
  }
  func.func @transform_4(%arg0: i32) -> (i32, i32) {
    %c0_i32 = arith.constant 0 : i32
    %c0_i32_0 = arith.constant 0 : i32
    %c0_i32_1 = arith.constant 0 : i32
    return %c0_i32, %c0_i32_0 : i32, i32
  }
  func.func @transform_5(%arg0: i32) -> (i32, i32) {
    %c0_i32 = arith.constant 0 : i32
    %c0_i32_0 = arith.constant 0 : i32
    %c0_i32_1 = arith.constant 0 : i32
    return %c0_i32, %c0_i32_0 : i32, i32
  }
  func.func @transform_6(%arg0: i32) -> (i32, i32) {
    %c0_i32 = arith.constant 0 : i32
    %c0_i32_0 = arith.constant 0 : i32
    %c0_i32_1 = arith.constant 0 : i32
    return %c0_i32, %c0_i32_0 : i32, i32
  }
  func.func @transform_7(%arg0: i32) -> (i32, i32) {
    %c0_i32 = arith.constant 0 : i32
    %c0_i32_0 = arith.constant 0 : i32
    %c0_i32_1 = arith.constant 0 : i32
    return %c0_i32, %c0_i32_0 : i32, i32
  }
  func.func @transform_8(%arg0: i32) -> (i32, i32) {
    %c0_i32 = arith.constant 0 : i32
    %c0_i32_0 = arith.constant 0 : i32
    %c0_i32_1 = arith.constant 0 : i32
    return %c0_i32, %c0_i32_0 : i32, i32
  }
  func.func @transform_9(%arg0: i32) -> (i32, i32) {
    %c0_i32 = arith.constant 0 : i32
    %c0_i32_0 = arith.constant 0 : i32
    %c0_i32_1 = arith.constant 0 : i32
    return %c0_i32, %c0_i32_0 : i32, i32
  }
  func.func @transform_10(%arg0: i32) -> (i32, i32, i32) {
    %c0_i32 = arith.constant 0 : i32
    %c0_i32_0 = arith.constant 0 : i32
    %c0_i32_1 = arith.constant 0 : i32
    return %arg0, %c0_i32, %c0_i32_0 : i32, i32, i32
  }
  func.func @transform_11(%arg0: i32) -> (i32, i32, i32) {
    %c0_i32 = arith.constant 0 : i32
    %c0_i32_0 = arith.constant 0 : i32
    %c0_i32_1 = arith.constant 0 : i32
    return %arg0, %c0_i32, %c0_i32_0 : i32, i32, i32
  }
}

</mosaic_0001>

<bundles_post_ra>
// kernel: tpu_custom_call.1
= control target key start
LH: loop header
LB: loop body
LE: loop exit
PB: predicated region body
PF: predicated region fallthrough
CT: control target
= control target key end

     0   :  { %s3118_s0 = inlined_call_operand.hbm [shape: bf16[3,32,48], index: 0, kind: input, shape index: {}]   ;;  %s3119_s1 = inlined_call_operand.hbm [shape: bf16[3,32,32], index: 1, kind: input, shape index: {}]   ;;  %s3120_s2 = inlined_call_operand.hbm [shape: bf16[48,512], index: 2, kind: input, shape index: {}]   ;;  %s3121_s3 = inlined_call_operand.hbm [shape: f32[1,512], index: 3, kind: input, shape index: {}]   ;;  %s3122_s4 = inlined_call_operand.hbm [shape: bf16[512,128], index: 4, kind: input, shape index: {}]   ;;  %s3123_s5 = inlined_call_operand.vmem [shape: f32[1,128], index: 5, kind: input, shape index: {}]   ;;  %s3124_s6 = inlined_call_operand.hbm [shape: bf16[128,128], index: 6, kind: input, shape index: {}]   ;;  %s3125_s7 = inlined_call_operand.vmem [shape: f32[1,128], index: 7, kind: input, shape index: {}]   ;;  %s3126_s8 = inlined_call_operand.hbm [shape: bf16[128,128], index: 8, kind: input, shape index: {}]   ;;  %s3127_s9 = inlined_call_operand.vmem [shape: f32[1,128], index: 9, kind: input, shape index: {}]   ;;  %s3128_s10 = inlined_call_operand.hbm [shape: bf16[3,16,128], index: 10, kind: output, shape index: {0}]   ;;  %s3129_s11 = inlined_call_operand.hbm [shape: f32[3,1,128], index: 11, kind: output, shape index: {1}]  }
   0x1   :  { %3137 = sst [smem:[#allocation27_spill]] %s3118_s0 }
   0x2   :  { %3138 = sst [smem:[#allocation28_spill]] %s3120_s2 }
   0x3   :  { %3139 = sst [smem:[#allocation29_spill]] %s3121_s3 }
   0x4   :  { %3140 = sst [smem:[#allocation30_spill]] %s3122_s4 }
   0x5   :  { %3141 = sst [smem:[#allocation31_spill]] %s3124_s6 }
   0x6   :  { %3142 = sst [smem:[#allocation32_spill]] %s3126_s8 }
   0x7   :  { %17 = vsyncpa [#allocation3], 0 }
   0x8   :  { %19 = vsyncpa [#allocation3 + $0x1], 0 }
   0x9   :  { %20 = vsyncpa [#allocation6], 0 }
   0xa   :  { %22 = vsyncpa [#allocation6 + $0x1], 0 }
   0xb   :  { %23 = vsyncpa [#allocation9], 0 }
   0xc   :  { %24 = vsyncpa [#allocation12], 0 }
   0xd   :  { %25 = vsyncpa [#allocation4], 0 }
   0xe   :  { %27 = vsyncpa [#allocation4 + $0x1], 0 }
   0xf   :  { %28 = vsyncpa [#allocation16], 0 }
  0x10   :  { %30 = vsyncpa [#allocation16 + $0x1], 0  ;;  %s2741_s17 = smov 0   ;;  %s2743_s18 = smov 0  }
  0x11   :  { %s2745_s19 = smov 0   ;;  %s2747_s20 = smov 0  }
  0x12 LB: > { %3143 = sst [smem:[#allocation24_spill]] %s2664_s19  ;;  %s2765_s24 = sadd.s32 4294967295, %s2668_s20   ;;  %s2668_s20 = sphi %s2747_s20, %s3161_s20   ;;  %s2664_s19 = sphi %s2745_s19, %s3163_s19   ;;  %s2660_s18 = sphi %s2743_s18, %s3165_s18   ;;  %s2656_s17 = sphi %s2741_s17, %s3164_s17  }
  0x13   : > { %s3144_s2 = sld [smem:[#allocation28_spill]]  ;;  %p1821_p0 = scmp.ge.s32.totalorder %s2668_s20, 1 }
  0x14   : > { %p57_p1 = scmp.eq.s32.totalorder %s2765_s24, 0  ;;  %p313_p2 = scmp.lt.s32.totalorder %s2668_s20, 4 }
  0x15   : > { %s2670_s26 = smov [#allocation7]   ;;  %s3146_s3 = sld [smem:[#allocation29_spill]] }
  0x16   : > { %p2770_p3 = pnand %p1821_p0, %p313_p2  ;;  %s326_s27 = sshll.u32 %s2670_s26, 4  ;;  %s327_s27 = int_to_ptr.vmem [resolvable:$true] %s326_s27 }
  0x17   : > { %s2671_s13 = smov [#allocation8]   ;;  %s2672_s15 = smov 256  }
  0x18   : > { %p2224_p4 = pneg %p2770_p3  ;;  %s341_s14 = sshll.u32 %s2671_s13, 4  ;;  %s342_s14 = int_to_ptr.vmem [resolvable:$true] %s341_s14 }
  0x19   : > { %s324_s23 = sshll.u32 %s3144_s2, 4  ;;  %s2673_s16 = smov 16   ;;  %s325_s23 = int_to_ptr.hbm [resolvable:$true] %s324_s23 }
  0x1a   : > { %p2781_p5 = pnand %p2224_p4, %p57_p1  ;;  %s3148_s6 = sld [smem:[#allocation31_spill]] }
  0x1b   : > { %s339_s30 = sshll.u32 %s3146_s3, 4  ;;  %s2674_s28 = smov [#allocation11]   ;;  %s340_s30 = int_to_ptr.hbm [resolvable:$true] %s339_s30 }
  0x1c   : > { %2227 = dma.hbm_to_vmem [thread:$0]  (!%p2781_p5), %s325_s23, 1536, %s327_s27, [#allocation6], %s2672_s15, %s2672_s15, %s2673_s16  }
  0x1d   : > { %2230 = dma.hbm_to_vmem [thread:$0]  (!%p2781_p5), %s340_s30, 64, %s342_s14, [#allocation9]  }
  0x1e   : > { %s369_s29 = sshll.u32 %s2674_s28, 4  ;;  %s3149_s4 = sld [smem:[#allocation30_spill]]  ;;  %s370_s29 = int_to_ptr.vmem [resolvable:$true] %s369_s29 }
  0x1f   : > { %s3130_s23 = smov 64   ;;  %s3132_s27 = smov 4  }
  0x20   : > { %s367_s26 = sshll.u32 %s3148_s6, 4  ;;  %s2677_s30 = smov [#allocation10]   ;;  %s368_s26 = int_to_ptr.hbm [resolvable:$true] %s367_s26 }
  0x21   : > { %2236 = dma.hbm_to_vmem [thread:$0]  (!%p2781_p5), %s368_s26, 1024, %s370_s29, [#allocation12], %s3130_s23, %s3130_s23, %s3132_s27  }
  0x22   : > { %s352_s14 = sshll.u32 %s2677_s30, 4  ;;  %s3150_s8 = sld [smem:[#allocation32_spill]]  ;;  %s353_s14 = int_to_ptr.vmem [resolvable:$true] %s352_s14 }
  0x23   : > { %s2678_s16 = smov [#allocation13]   ;;  %s1820_s22 = sadd.s32 4294967294, %s2668_s20  }
  0x24   : > { %s350_s13 = sshll.u32 %s3149_s4, 4  ;;  %s386_s21 = sshll.u32 %s2678_s16, 4  ;;  %s351_s13 = int_to_ptr.hbm [resolvable:$true] %s350_s13  ;;  %s387_s21 = int_to_ptr.vmem [resolvable:$true] %s386_s21 }
  0x25   : > { %2233 = dma.hbm_to_vmem [thread:$0]  (!%p2781_p5), %s351_s13, 4096, %s353_s14, [#allocation9], %s3130_s23, %s3130_s23, %s3132_s27  }
  0x26   : > { %s2815_s26 = sadd.s32 1, %s2668_s20   ;;  %s43_s28 = sadd.s32 1, %s2664_s19 }
  0x27   : > { %3151 = sst [smem:[#allocation25_spill]] %s2815_s26  ;;  %s40_s29 = ssub.s32 %s2668_s20, %s2815_s26 }
  0x28   : > { %s384_s3 = sshll.u32 %s3150_s8, 4  ;;  %p50_p6 = scmp.ne.s32.totalorder %s2664_s19, %s2660_s18  ;;  %s385_s3 = int_to_ptr.hbm [resolvable:$true] %s384_s3 }
  0x29   : > { %2239 = dma.hbm_to_vmem [thread:$0]  (!%p2781_p5), %s385_s3, 1024, %s387_s21, [#allocation12], %s3130_s23, %s3130_s23, %s3132_s27  }
  0x2a   : > { %p41_p7 = scmp.eq.s32.totalorder %s40_s29, 0  ;;  %p51_p8 = scmp.eq.s32.totalorder %s2668_s20, 0 }
  0x2b   : > { %p56_p9 = scmp.ne.s32.totalorder %s2660_s18, %s2656_s17  ;;  %p274_p10 = scmp.eq.s32.totalorder %s2765_s24, 2 }
  0x2c   : > { %s2827_s13 = scalar_select %p41_p7, %s2664_s19, %s43_s28  }
  0x2d   : > { %p2829_p11 = por %p51_p8, %p50_p6  ;;  %p2835_p12 = por %p57_p1, %p56_p9 }
  0x2e   : > { %3152 = sst [smem:[#allocation26_spill]] %s2827_s13  ;;  %p2839_p13 = por %p274_p10, %p50_p6 }
  0x2f   : > { %p280_p0 = scmp.eq.s32.totalorder %s1820_s22, 2  ;;  %p2259_p2 = scmp.lt.s32.totalorder %s2668_s20, 3 }
  0x30   : > { %s403_s15 = sand.u32 1, %s2664_s19   ;;  %s2116_s16 = sshll.u32 %s2668_s20, 4 }
  0x31   : > { %p2845_p4 = por %p280_p0, %p56_p9  ;;  %s1828_s3 = sshll.u32 %s403_s15, 4 }
  0x32   : > { %s3157_s0 = sld [smem:[#allocation27_spill]]  ;;  %s407_s27 = scalar_lea.vmem [#allocation2], %s1828_s3 }
  0x33   : > { %s415_s4 = sshll.u32 %s407_s27, 4  ;;  %p2855_p5 = pnand %p2259_p2, %p2829_p11  ;;  %s416_s4 = int_to_ptr.vmem [resolvable:$true] %s415_s4 }
  0x34   : > { %s434_s13 = scalar_lea.hbm %s3119_s1, %s2116_s16  ;;  %s429_s19 = scalar_lea.vmem [#allocation5], %s1828_s3 }
  0x35   : > { %s2862_s26 = sshll.u32 %s429_s19, 4  ;;  %s435_s21 = sshll.u32 %s434_s13, 4  ;;  %s436_s21 = int_to_ptr.hbm [resolvable:$true] %s435_s21  ;;  %s438_s26 = int_to_ptr.vmem [resolvable:$true] %s2862_s26 }
  0x36   : > { %s404_s28 = scalar_lea.sflag [#allocation3], %s403_s15  ;;  %p2498_p7 = pneg %p2855_p5 }
  0x38   : > { %s412_s29 = scalar_lea.hbm %s3157_s0, %s2116_s16  ;;  %s2501_s8 = scalar_lea.hbm %s3157_s0, 48 }
  0x39   : > { %s413_s23 = sshll.u32 %s412_s29, 4  ;;  %s414_s23 = int_to_ptr.hbm [resolvable:$true] %s413_s23 }
  0x3a   : > { %s2494_s29 = sshra.s32 %s414_s23, 4  ;;  %s2495_s29 = int_to_ptr.hbm [resolvable:$true] %s2494_s29 }
  0x3b   : > { %s2496_s27 = scalar_lea.hbm %s2495_s29, 16  ;;  %p2502_p10 = scmp.lt.s32.totalorder %s2495_s29, %s3157_s0 }
  0x3c   : > { %p2497_p6 = scmp.ne.s32.totalorder %s2495_s29, %s2496_s27  ;;  %p2503_p11 = scmp.lt.s32.totalorder %s2501_s8, %s2496_s27 }
  0x3e   : > { %p2499_p8 = pnand %p2498_p7, %p2497_p6  ;;  %p2504_p0 = por %p2503_p11, %p2502_p10 }
  0x40   : > { %p2500_p9 = pneg %p2499_p8 }
  0x42   : > { %p2505_p2 = pnand %p2504_p0, %p2500_p9 }
  0x44   : > { %2508 = shalt.err (!%p2505_p2)
}
  0x45   : > { %s3159_s19 = smov 4   ;;  %s3160_s13 = smov 64  }
  0x46   : > { %2243 = dma.hbm_to_vmem [thread:$0]  (!%p2855_p5), %s414_s23, 256, %s416_s4, %s404_s28, %s3160_s13, %s3160_s13, %s3159_s19  }
  0x47   : > { %s425_s15 = sand.u32 1, %s2668_s20   ;;  %s2524_s6 = sshra.s32 %s436_s21, 4  ;;  %s2525_s6 = int_to_ptr.hbm [resolvable:$true] %s2524_s6 }
  0x48   : > { %s426_s12 = scalar_lea.sflag [#allocation6], %s425_s15  ;;  %s2526_s29 = scalar_lea.hbm %s2525_s6, 16 }
  0x49   : > { %p2527_p6 = scmp.ne.s32.totalorder %s2525_s6, %s2526_s29  ;;  %s2531_s16 = scalar_lea.hbm %s3119_s1, 48 }
  0x4a   : > { %p2532_p10 = scmp.lt.s32.totalorder %s2525_s6, %s3119_s1  ;;  %p2533_p11 = scmp.lt.s32.totalorder %s2531_s16, %s2526_s29 }
  0x4b   : > { %p2529_p8 = pnand %p2527_p6, %p2498_p7 }
  0x4c   : > { %p2534_p0 = por %p2533_p11, %p2532_p10 }
  0x4d   : > { %p2530_p9 = pneg %p2529_p8 }
  0x4f   : > { %p2535_p2 = pnand %p2534_p0, %p2530_p9 }
  0x51   : > { %2538 = shalt.err (!%p2535_p2)
}
  0x52   : > { %2246 = dma.hbm_to_vmem [thread:$0]  (!%p2855_p5), %s436_s21, 256, %s438_s26, %s426_s12, %s3160_s13, %s3160_s13, %s3159_s19  }
  0x53   : > { %449 = sbr.rel (%p2770_p3) target bundleno = 1281 (0x501), region = 60  ;;  %s2899_s4 = sand.u32 (!%p2770_p3), 1, %s2660_s18  }
  0x54   : > { %s1835_s0 = sshll.u32 (!%p2770_p3), %s2899_s4, 4  ;;  %s452_s23 = scalar_lea.sflag (!%p2770_p3), [#allocation3], %s2899_s4 }
  0x55   : > { %s2903_s28 = scalar_lea.vmem (!%p2770_p3), [#allocation2], %s1835_s0 }
  0x58   : > { %2627 = dma.done.wait (%p2835_p12), %s452_s23, 256  }
  0x59   : > { %2629 = vsyncadd (%p2835_p12), %s452_s23, 4294967040  ;;  %s461_s26 = sand.u32 1, %s2765_s24   ;;  %s2910_s22 = scalar_lea.vmem [#allocation5], %s1835_s0 }
  0x5a   : > { %s462_s25 = scalar_lea.sflag [#allocation6], %s461_s26 }
  0x5b   : > { %2631 = dma.done.wait (%p2835_p12), %s462_s25, 256  }
  0x5c   : > { %2633 = vsyncadd (%p2835_p12), %s462_s25, 4294967040 }
  0x5d   : > { %2635 = dma.done.wait (%p57_p1), [#allocation6], 1536  }
  0x5e   : > { %2637 = vsyncadd (%p57_p1), [#allocation6], 4294965760 }
  0x5f   : > { %2639 = dma.done.wait (%p57_p1), [#allocation9], 4160  }
  0x60   : > { %2641 = vsyncadd (%p57_p1), [#allocation9], 4294963136 }
  0x61   : > { %2643 = dma.done.wait (%p57_p1), [#allocation12], 2048  }
  0x62   : > { %2645 = vsyncadd (%p57_p1), [#allocation12], 4294965248  ;;  %v1885_v0 = vld [vmem:[#allocation7 + $0x40] sm:$0xf]  ;;  %v2130_v1 = vld [vmem:[#allocation7 + $0x4c] sm:$0xf0] }
  0x63   : > { %v2128_v2 = vld [vmem:[#allocation7 + $0x44] sm:$0xf]  ;;  %v1886_v3 = vor.u32 %v2130_v1, %v1885_v0  ;;  %v1887_v4 = vld [vmem:[#allocation7 + $0x50] sm:$0xf0]  ;;  %v1893_v5 = vld [vmem:[#allocation7 + $0x48] sm:$0xf] }
  0x64   : > { %v2131_v6 = vld [vmem:[#allocation7 + $0x54] sm:$0xf0]  ;;  %v1890_v7 = vor.u32 %v2128_v2, %v1887_v4  ;;  %v2129_v9 = vld [vmem:[#allocation7 + $0x4c] sm:$0xf]  ;;  %v1895_v10 = vld [vmem:[#allocation7 + $0x58] sm:$0xf0] }
  0x65   : > { %v1894_v8 = vor.u32 %v2131_v6, %v1893_v5  ;;  %v1869_v11 = vld [vmem:[#allocation7 + $0x20] sm:$0xf]  ;;  %648 = vmatpush.bf16.msra.mxu0 %v1886_v3  ;;  %v1898_v12 = vor.u32 %v2129_v9, %v1895_v10  ;;  %v2126_v13 = vld [vmem:[#allocation7 + $0x2c] sm:$0xf0]  ;;  %v2124_v14 = vld [vmem:[#allocation7 + $0x24] sm:$0xf] }
  0x66   : > { %v1871_v15 = vld [vmem:[#allocation7 + $0x30] sm:$0xf0]  ;;  %667 = vmatpush.bf16.msra.mxu1 %v1890_v7  ;;  %v1870_v16 = vor.u32 %v2126_v13, %v1869_v11  ;;  %v1877_v18 = vld [vmem:[#allocation7 + $0x28] sm:$0xf]  ;;  %v2127_v19 = vld [vmem:[#allocation7 + $0x34] sm:$0xf0] }
  0x67   : > { %686 = vmatpush.bf16.msra.mxu2 %v1894_v8  ;;  %v1874_v17 = vor.u32 %v2124_v14, %v1871_v15  ;;  %v2125_v20 = vld [vmem:[#allocation7 + $0x2c] sm:$0xf]  ;;  %705 = vmatpush.bf16.msra.mxu3 %v1898_v12  ;;  %v1878_v21 = vor.u32 %v2127_v19, %v1877_v18  ;;  %v1879_v22 = vld [vmem:[#allocation7 + $0x38] sm:$0xf0]  ;;  %v1853_v23 = vld [vmem:[#allocation7] sm:$0xf] }
  0x68   : > { %v2122_v24 = vld [vmem:[#allocation7 + $0xc] sm:$0xf0]  ;;  %v1882_v25 = vor.u32 %v2125_v20, %v1879_v22  ;;  %v2120_v26 = vld [vmem:[#allocation7 + $0x4] sm:$0xf]  ;;  %v1855_v27 = vld [vmem:[#allocation7 + $0x10] sm:$0xf0] }
  0x69   : > { %v1861_v28 = vld [vmem:[#allocation7 + $0x8] sm:$0xf]  ;;  %649 = vmatpush.bf16.msra.mxu0 %v1870_v16  ;;  %v1854_v29 = vor.u32 %v2122_v24, %v1853_v23  ;;  %v2123_v30 = vld [vmem:[#allocation7 + $0x14] sm:$0xf0]  ;;  %v2121_v31 = vld [vmem:[#allocation7 + $0xc] sm:$0xf]  ;;  %v1858_v33 = vor.u32 %v2120_v26, %v1855_v27 }
  0x6a   : > { %v1863_v32 = vld [vmem:[#allocation7 + $0x18] sm:$0xf0]  ;;  %668 = vmatpush.bf16.msra.mxu1 %v1874_v17  ;;  %v1862_v34 = vor.u32 %v2123_v30, %v1861_v28  ;;  %v2118_v37 = vld [vmem:[%s2903_s28] sm:$0xff]  ;;  %vm636_vm0 = vcmask 392192   ;;  %s2182_s6 = sshll.u32 %s2765_s24, 3  ;;  %s1842_s29 = sshll.u32 %s2899_s4, 3 }
  0x6b   : > { %687 = vmatpush.bf16.msra.mxu2 %v1878_v21  ;;  %706 = vmatpush.bf16.msra.mxu3 %v1882_v25  ;;  %v1866_v35 = vor.u32 %v2121_v31, %v1863_v32  ;;  %v2139_v36 = vld [vmem:[#allocation10 + $0x38] sm:$0xff]  ;;  %v2138_v40 = vld [vmem:[#allocation10 + $0x30] sm:$0xff]  ;;  %v2137_v44 = vld [vmem:[#allocation10 + $0x28] sm:$0xff]  ;;  %s1632_s16 = scalar_lea.hbm %s3128_s10, %s2182_s6  ;;  %s532_s3 = scalar_lea.vmem [#allocation14], %s1842_s29 }
  0x6c   : > { %v2147_v38 = vld [vmem:[#allocation10 + $0x78] sm:$0xff]  ;;  %v2146_v42 = vld [vmem:[#allocation10 + $0x70] sm:$0xff]  ;;  %v2145_v46 = vld [vmem:[#allocation10 + $0x68] sm:$0xff]  ;;  %s1633_s0 = sshll.u32 %s532_s3, 4  ;;  %s1635_s23 = sshll.u32 %s1632_s16, 4  ;;  %s1634_s0 = int_to_ptr.vmem [resolvable:$true] %s1633_s0  ;;  %s1636_s23 = int_to_ptr.hbm [resolvable:$true] %s1635_s23 }
  0x6d   : > { %650 = vmatpush.bf16.msra.mxu0 %v1854_v29  ;;  %v2155_v39 = vld [vmem:[#allocation10 + $0xb8] sm:$0xff]  ;;  %v2154_v43 = vld [vmem:[#allocation10 + $0xb0] sm:$0xff]  ;;  %v2153_v47 = vld [vmem:[#allocation10 + $0xa8] sm:$0xff]  ;;  %s2568_s26 = sshra.s32 %s1636_s23, 4  ;;  %s2574_s21 = scalar_lea.hbm %s3128_s10, 24  ;;  %s2569_s26 = int_to_ptr.hbm [resolvable:$true] %s2568_s26 }
  0x6e   : > { %669 = vmatpush.bf16.msra.mxu1 %v1858_v33  ;;  %v2163_v41 = vld [vmem:[#allocation10 + $0xf8] sm:$0xff]  ;;  %v2162_v45 = vld [vmem:[#allocation10 + $0xf0] sm:$0xff]  ;;  %v2136_v48 = vld [vmem:[#allocation10 + $0x20] sm:$0xff]  ;;  %s2570_s25 = scalar_lea.hbm %s2569_s26, 8  ;;  %p2575_p5 = scmp.lt.s32.totalorder %s2569_s26, %s3128_s10 }
  0x6f   : > { %688 = vmatpush.bf16.msra.mxu2 %v1862_v34  ;;  %707 = vmatpush.bf16.msra.mxu3 %v1866_v35  ;;  %v2161_v49 = vld [vmem:[#allocation10 + $0xe8] sm:$0xff]  ;;  %v2144_v50 = vld [vmem:[#allocation10 + $0x60] sm:$0xff]  ;;  %v2135_v52 = vld [vmem:[#allocation10 + $0x18] sm:$0xff]  ;;  %p2571_p1 = scmp.ne.s32.totalorder %s2569_s26, %s2570_s25  ;;  %p2576_p7 = scmp.lt.s32.totalorder %s2574_s21, %s2570_s25 }
  0x70   : > { %1899 = vmatmul.msk.bf16.vlgmr.msra.gmra.mxu0 %vm636_vm0, %v2118_v37  ;;  %v2119_v51 = vld [vmem:[%s2903_s28 + $0x8] sm:$0xff]  ;;  %v556_v6 = vld [vmem:[#allocation8] sm:$0xf]  ;;  %s1617_s28 = scalar_lea.sflag [#allocation4], %s2899_s4 }
  0x71   : > { %1035 = vmatpush.bf16.msrb.mxu0 %v2139_v36  ;;  %1901 = vmatmul.msk.bf16.vlgmr.msra.gmra.mxu1 %vm636_vm0, %v2118_v37  ;;  %v2143_v53 = vld [vmem:[#allocation10 + $0x58] sm:$0xff]  ;;  %v2152_v54 = vld [vmem:[#allocation10 + $0xa0] sm:$0xff]  ;;  %v2134_v56 = vld [vmem:[#allocation10 + $0x10] sm:$0xff]  ;;  %v2938_v8 = vperm.slane %v556_v6, 1  ;;  %v558_v9 = vperm.slane %v556_v6, 0  ;;  %v2941_v15 = vperm.slane %v556_v6, 2  ;;  %p2572_p3 = pnand %p2571_p1, %p2839_p13  ;;  %p2577_p6 = por %p2576_p7, %p2575_p5 }
  0x72   : > { %1054 = vmatpush.bf16.msrb.mxu1 %v2147_v38  ;;  %1903 = vmatmul.msk.bf16.vlgmr.msra.gmra.mxu2 %vm636_vm0, %v2118_v37  ;;  %v2160_v55 = vld [vmem:[#allocation10 + $0xe0] sm:$0xff]  ;;  %v2142_v57 = vld [vmem:[#allocation10 + $0x50] sm:$0xff]  ;;  %v2151_v58 = vld [vmem:[#allocation10 + $0x98] sm:$0xff]  ;;  %v2943_v20 = vperm.slane %v556_v6, 3 }
  0x73   : > { %1905 = vmatmul.msk.bf16.vlgmr.msra.gmra.mxu3 %vm636_vm0, %v2118_v37  ;;  %1073 = vmatpush.bf16.msrb.mxu2 %v2155_v39  ;;  %v2159_v59 = vld [vmem:[#allocation10 + $0xd8] sm:$0xff]  ;;  %v2133_v60 = vld [vmem:[#allocation10 + $0x8] sm:$0xff]  ;;  %v2150_v62 = vld [vmem:[#allocation10 + $0x90] sm:$0xff]  ;;  %p2573_p12 = pneg %p2572_p3 }
  0x74   : > { %1092 = vmatpush.bf16.msrb.mxu3 %v2163_v41  ;;  %v2141_v61 = vld [vmem:[#allocation10 + $0x48] sm:$0xff]  ;;  %v2158_v63 = vld [vmem:[#allocation10 + $0xd0] sm:$0xff]  ;;  %v2132_v0 = vld [vmem:[#allocation10] sm:$0xff] }
  0x75   : > { %1036 = vmatpush.bf16.msrb.mxu0 %v2138_v40  ;;  %v2140_v1 = vld [vmem:[#allocation10 + $0x40] sm:$0xff]  ;;  %v2149_v2 = vld [vmem:[#allocation10 + $0x88] sm:$0xff]  ;;  %v2173_v18 = vld [vmem:[#allocation11 + $0x38] sm:$0xff]  ;;  %p2578_p8 = pnand %p2577_p6, %p2573_p12 }
  0x76   : > { %1055 = vmatpush.bf16.msrb.mxu1 %v2146_v42  ;;  %v2157_v3 = vld [vmem:[#allocation10 + $0xc8] sm:$0xff]  ;;  %v2148_v4 = vld [vmem:[#allocation10 + $0x80] sm:$0xff] }
  0x77   : > { %1074 = vmatpush.bf16.msrb.mxu2 %v2154_v43  ;;  %v2156_v5 = vld [vmem:[#allocation10 + $0xc0] sm:$0xff] }
  0x78   : > { %1093 = vmatpush.bf16.msrb.mxu3 %v2162_v45 }
  0x79   : > { %1037 = vmatpush.bf16.msrb.mxu0 %v2137_v44 }
  0x7a   : > { %1056 = vmatpush.bf16.msrb.mxu1 %v2145_v46 }
  0x7b   : > { %1075 = vmatpush.bf16.msrb.mxu2 %v2153_v47 }
  0x7c   : > { %1094 = vmatpush.bf16.msrb.mxu3 %v2161_v49 }
  0x7d   : > { %1038 = vmatpush.bf16.msrb.mxu0 %v2136_v48 }
  0x7e   : > { %1057 = vmatpush.bf16.msrb.mxu1 %v2144_v50 }
  0x7f   : > { %1076 = vmatpush.bf16.msrb.mxu2 %v2152_v54 }
  0x80   : > { %1900 = vmatmul.msk.bf16.gmra.mxu0 %vm636_vm0, %v2119_v51  ;;  %1095 = vmatpush.bf16.msrb.mxu3 %v2160_v55 }
  0x81   : > { %1902 = vmatmul.msk.bf16.gmra.mxu1 %vm636_vm0, %v2119_v51  ;;  %1039 = vmatpush.bf16.msrb.mxu0 %v2135_v52 }
  0x82   : > { %1904 = vmatmul.msk.bf16.gmra.mxu2 %vm636_vm0, %v2119_v51  ;;  %1058 = vmatpush.bf16.msrb.mxu1 %v2143_v53 }
  0x83   : > { %1906 = vmatmul.msk.bf16.gmra.mxu3 %vm636_vm0, %v2119_v51  ;;  %1077 = vmatpush.bf16.msrb.mxu2 %v2151_v58 }
  0x84   : > { %1096 = vmatpush.bf16.msrb.mxu3 %v2159_v59 }
  0x85   : > { %1040 = vmatpush.bf16.msrb.mxu0 %v2134_v56 }
  0x86   : > { %1059 = vmatpush.bf16.msrb.mxu1 %v2142_v57 }
  0x87   : > { %1078 = vmatpush.bf16.msrb.mxu2 %v2150_v62 }
  0x88   : > { %1097 = vmatpush.bf16.msrb.mxu3 %v2158_v63 }
  0x89   : > { %1041 = vmatpush.bf16.msrb.mxu0 %v2133_v60 }
  0x8a   : > { %1060 = vmatpush.bf16.msrb.mxu1 %v2141_v61 }
  0x8b   : > { %1079 = vmatpush.bf16.msrb.mxu2 %v2149_v2 }
  0x8c   : > { %1098 = vmatpush.bf16.msrb.mxu3 %v2157_v3 }
  0x8d   : > { %1042 = vmatpush.bf16.msrb.mxu0 %v2132_v0 }
  0x8e   : > { %1061 = vmatpush.bf16.msrb.mxu1 %v2140_v1 }
  0x8f   : > { %1080 = vmatpush.bf16.msrb.mxu2 %v2148_v4 }
  0x90   : > { %1099 = vmatpush.bf16.msrb.mxu3 %v2156_v5 }
  0x91   : > { %1197 = vmatpush.bf16.msra.mxu0 %v2173_v18 }
  0x92   : > { %2188 = vmatpush.bf16.msra.mxu1 %v2173_v18 }
  0xed   : > { %v652_v7 = vpop.f32.mrf.mxu0 }
  0xee   : > { %v671_v10 = vpop.f32.mrf.mxu1  ;;  %v653_v12 = vadd.f32 %v652_v7, %v558_v9 }
  0xef   : > { %v672_v11 = vadd.f32 %v671_v10, %v2938_v8 }
  0xf0   : > { %v735_v19 = vmul.f32 0.01, %v653_v12  ;;  %vm719_vm2 = vcmp.gt.f32.partialorder %v653_v12, 0.0 }
  0xf1   : > { %v736_v14 = vmul.f32 0.01, %v672_v11  ;;  %vm720_vm1 = vcmp.gt.f32.partialorder %v672_v11, 0.0 }
  0xf2   : > { %v751_v29 = vsel %vm719_vm2, %v653_v12, %v735_v19 }
  0xf3   : > { %v752_v27 = vsel %vm720_vm1, %v672_v11, %v736_v14 }
  0xf5   : > { %v690_v13 = vpop.f32.mrf.mxu2  ;;  %v654_v17 = vpop.f32.mrf.mxu0 }
  0xf6   : > { %v709_v16 = vpop.f32.mrf.mxu3  ;;  %v655_v21 = vadd.f32 %v654_v17, %v558_v9  ;;  %v673_v22 = vpop.f32.mrf.mxu1  ;;  %v691_v25 = vadd.f32 %v690_v13, %v2941_v15 }
  0xf7   : > { %v674_v23 = vadd.f32 %v673_v22, %v2938_v8  ;;  %v710_v28 = vadd.f32 %v709_v16, %v2943_v20  ;;  %v2171_v22 = vld [vmem:[#allocation11 + $0x28] sm:$0xff] }
  0xf8   : > { %vm723_vm3 = vcmp.gt.f32.partialorder %v655_v21, 0.0  ;;  %v739_v24 = vmul.f32 0.01, %v655_v21  ;;  %v737_v35 = vmul.f32 0.01, %v691_v25  ;;  %vm721_vm5 = vcmp.gt.f32.partialorder %v691_v25, 0.0 }
  0xf9   : > { %vm724_vm4 = vcmp.gt.f32.partialorder %v674_v23, 0.0  ;;  %v740_v26 = vmul.f32 0.01, %v674_v23  ;;  %v738_v39 = vmul.f32 0.01, %v710_v28  ;;  %vm722_vm6 = vcmp.gt.f32.partialorder %v710_v28, 0.0 }
  0xfa   : > { %v755_v30 = vsel %vm723_vm3, %v655_v21, %v739_v24  ;;  %v753_v45 = vsel %vm721_vm5, %v691_v25, %v737_v35  ;;  %v2168_v24 = vld [vmem:[#allocation11 + $0x10] sm:$0xff]  ;;  %v2167_v25 = vld [vmem:[#allocation11 + $0x8] sm:$0xff] }
  0xfb   : > { %v767_v31 = vpack.c.bf16 %v755_v30, %v751_v29  ;;  %v756_v32 = vsel %vm724_vm4, %v674_v23, %v740_v26  ;;  %v754_v49 = vsel %vm722_vm6, %v710_v28, %v738_v39  ;;  %v2169_v23 = vld [vmem:[#allocation11 + $0x18] sm:$0xff]  ;;  %v2166_v26 = vld [vmem:[#allocation11] sm:$0xff] }
  0xfc   : > { %v768_v34 = vpack.c.bf16 %v756_v32, %v752_v27  ;;  %v2309_v29 = vld [vmem:[%s3123_s5] ss:$0 sm:$0xff] }
  0xfd   : > { %v692_v33 = vpop.f32.mrf.mxu2  ;;  %v657_v38 = vpop.f32.mrf.mxu0  ;;  %1043 = vmatmul.bf16.vlgmr.msrb.gmra.mxu0 %v767_v31 }
  0xfe   : > { %v693_v36 = vadd.f32 %v692_v33, %v2941_v15  ;;  %v711_v37 = vpop.f32.mrf.mxu3  ;;  %v676_v41 = vpop.f32.mrf.mxu1  ;;  %1062 = vmatmul.bf16.vlgmr.msrb.gmra.mxu1 %v768_v34  ;;  %v658_v47 = vadd.f32 %v657_v38, %v558_v9 }
  0xff   : > { %v712_v40 = vadd.f32 %v711_v37, %v2943_v20  ;;  %v677_v44 = vadd.f32 %v676_v41, %v2938_v8 }
 0x100   : > { %vm725_vm7 = vcmp.gt.f32.partialorder %v693_v36, 0.0  ;;  %v741_v42 = vmul.f32 0.01, %v693_v36  ;;  %v743_v56 = vmul.f32 0.01, %v658_v47  ;;  %vm727_vm10 = vcmp.gt.f32.partialorder %v658_v47, 0.0 }
 0x101   : > { %vm726_vm8 = vcmp.gt.f32.partialorder %v712_v40, 0.0  ;;  %v742_v43 = vmul.f32 0.01, %v712_v40  ;;  %v744_v53 = vmul.f32 0.01, %v677_v44  ;;  %vm728_vm9 = vcmp.gt.f32.partialorder %v677_v44, 0.0 }
 0x102   : > { %v757_v46 = vsel %vm725_vm7, %v693_v36, %v741_v42  ;;  %v759_v1 = vsel %vm727_vm10, %v658_v47, %v743_v56 }
 0x103   : > { %v769_v48 = vpack.c.bf16 %v757_v46, %v753_v45  ;;  %v758_v50 = vsel %vm726_vm8, %v712_v40, %v742_v43  ;;  %v760_v63 = vsel %vm728_vm9, %v677_v44, %v744_v53  ;;  %vm1228_vm9 = vcmask 261120  }
 0x104   : > { %v770_v51 = vpack.c.bf16 %v758_v50, %v754_v49 }
 0x105   : > { %v695_v52 = vpop.f32.mrf.mxu2  ;;  %1081 = vmatmul.bf16.vlgmr.msrb.gmra.mxu2 %v769_v48  ;;  %v659_v55 = vpop.f32.mrf.mxu0 }
 0x106   : > { %v714_v54 = vpop.f32.mrf.mxu3  ;;  %1100 = vmatmul.bf16.vlgmr.msrb.gmra.mxu3 %v770_v51  ;;  %v660_v57 = vadd.f32 %v659_v55, %v558_v9  ;;  %v678_v58 = vpop.f32.mrf.mxu1  ;;  %v696_v61 = vadd.f32 %v695_v52, %v2941_v15 }
 0x107   : > { %v679_v59 = vadd.f32 %v678_v58, %v2938_v8  ;;  %v715_v0 = vadd.f32 %v714_v54, %v2943_v20 }
 0x108   : > { %v747_v60 = vmul.f32 0.01, %v660_v57  ;;  %vm731_vm11 = vcmp.gt.f32.partialorder %v660_v57, 0.0  ;;  %v745_v7 = vmul.f32 0.01, %v696_v61  ;;  %vm729_vm13 = vcmp.gt.f32.partialorder %v696_v61, 0.0 }
 0x109   : > { %v748_v62 = vmul.f32 0.01, %v679_v59  ;;  %vm732_vm12 = vcmp.gt.f32.partialorder %v679_v59, 0.0  ;;  %v746_v10 = vmul.f32 0.01, %v715_v0  ;;  %vm730_vm15 = vcmp.gt.f32.partialorder %v715_v0, 0.0 }
 0x10a   : > { %v763_v2 = vsel %vm731_vm11, %v660_v57, %v747_v60  ;;  %v761_v14 = vsel %vm729_vm13, %v696_v61, %v745_v7 }
 0x10b   : > { %v771_v3 = vpack.c.bf16 %v763_v2, %v759_v1  ;;  %v764_v4 = vsel %vm732_vm12, %v679_v59, %v748_v62  ;;  %v762_v18 = vsel %vm730_vm15, %v715_v0, %v746_v10 }
 0x10c   : > { %v772_v6 = vpack.c.bf16 %v764_v4, %v760_v63 }
 0x10d   : > { %v697_v5 = vpop.f32.mrf.mxu2  ;;  %1048 = vmatmul.bf16.gmra.mxu0 %v771_v3 }
 0x10e   : > { %v698_v9 = vadd.f32 %v697_v5, %v2941_v15  ;;  %v716_v8 = vpop.f32.mrf.mxu3  ;;  %1067 = vmatmul.bf16.gmra.mxu1 %v772_v6  ;;  %v2172_v15 = vld [vmem:[#allocation11 + $0x30] sm:$0xff]  ;;  %v2310_v6 = vld [vmem:[%s3125_s7] ss:$0 sm:$0xff] }
 0x10f   : > { %v717_v11 = vadd.f32 %v716_v8, %v2943_v20  ;;  %1198 = vmatpush.bf16.msra.mxu0 %v2172_v15  ;;  %2189 = vmatpush.bf16.msra.mxu1 %v2172_v15  ;;  %v2170_v20 = vld [vmem:[#allocation11 + $0x20] sm:$0xff] }
 0x110   : > { %v749_v12 = vmul.f32 0.01, %v698_v9  ;;  %vm733_vm14 = vcmp.gt.f32.partialorder %v698_v9, 0.0 }
 0x111   : > { %v750_v13 = vmul.f32 0.01, %v717_v11  ;;  %vm734_vm0 = vcmp.gt.f32.partialorder %v717_v11, 0.0 }
 0x112   : > { %v765_v16 = vsel %vm733_vm14, %v698_v9, %v749_v12 }
 0x113   : > { %v773_v17 = vpack.c.bf16 %v765_v16, %v761_v14  ;;  %v766_v19 = vsel %vm734_vm0, %v717_v11, %v750_v13  ;;  %1199 = vmatpush.bf16.msra.mxu0 %v2171_v22  ;;  %2190 = vmatpush.bf16.msra.mxu1 %v2171_v22 }
 0x114   : > { %v774_v21 = vpack.c.bf16 %v766_v19, %v762_v18 }
 0x115   : > { %1086 = vmatmul.bf16.gmra.mxu2 %v773_v17 }
 0x116   : > { %1105 = vmatmul.bf16.gmra.mxu3 %v774_v21 }
 0x117   : > { %1200 = vmatpush.bf16.msra.mxu0 %v2170_v20  ;;  %2191 = vmatpush.bf16.msra.mxu1 %v2170_v20 }
 0x11b   : > { %1201 = vmatpush.bf16.msra.mxu0 %v2169_v23  ;;  %2192 = vmatpush.bf16.msra.mxu1 %v2169_v23 }
 0x11f   : > { %1202 = vmatpush.bf16.msra.mxu0 %v2168_v24  ;;  %2193 = vmatpush.bf16.msra.mxu1 %v2168_v24 }
 0x123   : > { %1203 = vmatpush.bf16.msra.mxu0 %v2167_v25  ;;  %2194 = vmatpush.bf16.msra.mxu1 %v2167_v25 }
 0x127   : > { %1204 = vmatpush.bf16.msra.mxu0 %v2166_v26  ;;  %2195 = vmatpush.bf16.msra.mxu1 %v2166_v26 }
 0x17a   : > { %v1044_v27 = vpop.f32.mrf.mxu0 }
 0x17b   : > { %v1063_v28 = vpop.f32.mrf.mxu1  ;;  %v1045_v31 = vadd.f32 %v2309_v29, %v1044_v27 }
 0x17d   : > { %v1064_v33 = vadd.f32 %v1063_v28, %v1045_v31  ;;  %v2181_v31 = vld [vmem:[#allocation13 + $0x38] sm:$0xff] }
 0x17e   : > { %1336 = vmatpush.bf16.msra.mxu2 %v2181_v31 }
 0x182   : > { %v1046_v30 = vpop.f32.mrf.mxu0 }
 0x183   : > { %v1065_v35 = vpop.f32.mrf.mxu1  ;;  %v1047_v36 = vadd.f32 %v2309_v29, %v1046_v30  ;;  %v2984_v30 = vld [vmem:[%s2910_s22 + $0x8] sm:$0xff] }
 0x185   : > { %v1066_v39 = vadd.f32 %v1065_v35, %v1047_v36  ;;  %v2177_v36 = vld [vmem:[#allocation13 + $0x18] sm:$0xff] }
 0x188   : > { %v1082_v32 = vpop.f32.mrf.mxu2 }
 0x189   : > { %v1101_v34 = vpop.f32.mrf.mxu3  ;;  %v1083_v37 = vadd.f32 %v1082_v32, %v1064_v33  ;;  %v2180_v32 = vld [vmem:[#allocation13 + $0x30] sm:$0xff]  ;;  %v2179_v33 = vld [vmem:[#allocation13 + $0x28] sm:$0xff] }
 0x18a   : > { %v1049_v38 = vpop.f32.mrf.mxu0  ;;  %1337 = vmatpush.bf16.msra.mxu2 %v2180_v32 }
 0x18b   : > { %v1102_v40 = vadd.f32 %v1101_v34, %v1083_v37  ;;  %v1068_v46 = vpop.f32.mrf.mxu1  ;;  %v1050_v47 = vadd.f32 %v2309_v29, %v1049_v38  ;;  %v2178_v34 = vld [vmem:[#allocation13 + $0x20] sm:$0xff]  ;;  %v2176_v37 = vld [vmem:[#allocation13 + $0x10] sm:$0xff] }
 0x18d   : > { %v1115_v44 = vmul.f32 0.01, %v1102_v40  ;;  %vm1111_vm1 = vcmp.gt.f32.partialorder %v1102_v40, 0.0  ;;  %v1069_v54 = vadd.f32 %v1068_v46, %v1050_v47 }
 0x18e   : > { %1338 = vmatpush.bf16.msra.mxu2 %v2179_v33 }
 0x18f   : > { %v1119_v49 = vsel %vm1111_vm1, %v1102_v40, %v1115_v44 }
 0x190   : > { %v1084_v41 = vpop.f32.mrf.mxu2 }
 0x191   : > { %v1085_v42 = vadd.f32 %v1084_v41, %v1066_v39  ;;  %v1103_v43 = vpop.f32.mrf.mxu3  ;;  %v2175_v39 = vld [vmem:[#allocation13 + $0x8] sm:$0xff] }
 0x192   : > { %v1051_v52 = vpop.f32.mrf.mxu0  ;;  %1339 = vmatpush.bf16.msra.mxu2 %v2178_v34 }
 0x193   : > { %v1104_v45 = vadd.f32 %v1103_v43, %v1085_v42  ;;  %v1052_v56 = vadd.f32 %v2309_v29, %v1051_v52  ;;  %v1070_v58 = vpop.f32.mrf.mxu1  ;;  %v2979_v29 = vld [vmem:[%s2910_s22] sm:$0xff] }
 0x194   : > { %v2174_v43 = vld [vmem:[#allocation13] sm:$0xff] }
 0x195   : > { %vm1112_vm2 = vcmp.gt.f32.partialorder %v1104_v45, 0.0  ;;  %v1116_v48 = vmul.f32 0.01, %v1104_v45  ;;  %v1071_v59 = vadd.f32 %v1070_v58, %v1052_v56 }
 0x196   : > { %1340 = vmatpush.bf16.msra.mxu2 %v2177_v36 }
 0x197   : > { %v1120_v50 = vsel %vm1112_vm2, %v1104_v45, %v1116_v48 }
 0x198   : > { %v1127_v51 = vpack.c.bf16 %v1120_v50, %v1119_v49  ;;  %v1087_v53 = vpop.f32.mrf.mxu2 }
 0x199   : > { %v1106_v55 = vpop.f32.mrf.mxu3  ;;  %v1088_v57 = vadd.f32 %v1087_v53, %v1069_v54 }
 0x19a   : > { %1205 = vmatmul.bf16.vlgmr.msra.gmra.mxu0 %v1127_v51  ;;  %1341 = vmatpush.bf16.msra.mxu2 %v2176_v37 }
 0x19b   : > { %v1107_v60 = vadd.f32 %v1106_v55, %v1088_v57 }
 0x19d   : > { %v1117_v0 = vmul.f32 0.01, %v1107_v60  ;;  %vm1113_vm3 = vcmp.gt.f32.partialorder %v1107_v60, 0.0 }
 0x19e   : > { %1342 = vmatpush.bf16.msra.mxu2 %v2175_v39 }
 0x19f   : > { %v1121_v3 = vsel %vm1113_vm3, %v1107_v60, %v1117_v0 }
 0x1a0   : > { %v1089_v61 = vpop.f32.mrf.mxu2 }
 0x1a1   : > { %v1090_v62 = vadd.f32 %v1089_v61, %v1071_v59  ;;  %v1108_v63 = vpop.f32.mrf.mxu3 }
 0x1a2   : > { %1343 = vmatpush.bf16.msra.mxu2 %v2174_v43 }
 0x1a3   : > { %v1109_v1 = vadd.f32 %v1108_v63, %v1090_v62 }
 0x1a5   : > { %vm1114_vm4 = vcmp.gt.f32.partialorder %v1109_v1, 0.0  ;;  %v1118_v2 = vmul.f32 0.01, %v1109_v1 }
 0x1a7   : > { %v1122_v4 = vsel %vm1114_vm4, %v1109_v1, %v1118_v2 }
 0x1a8   : > { %v1128_v5 = vpack.c.bf16 %v1122_v4, %v1121_v3 }
 0x1aa   : > { %1210 = vmatmul.bf16.vlgmr.msra.gmra.mxu1 %v1128_v5 }
 0x217   : > { %v1206_v7 = vpop.f32.mrf.mxu0 }
 0x218   : > { %v1207_v9 = vadd.f32 %v2310_v6, %v1206_v7 }
 0x21a   : > { %vm1378_vm5 = vcmp.gt.f32.partialorder %v1207_v9, 0.0  ;;  %v1382_v8 = vmul.f32 0.01, %v1207_v9 }
 0x21c   : > { %v2962_v10 = vsel %vm1378_vm5, %v1207_v9, %v1382_v8 }
 0x21d   : > { %v1450_v11 = vmul.f32 %v2962_v10, %v2962_v10 }
 0x21f   : > { %v1208_v12 = vpop.f32.mrf.mxu0  ;;  %1454 = vadd.xlane.f32.xlu1 %v1450_v11 }
 0x220   : > { %v1209_v13 = vadd.f32 %v2310_v6, %v1208_v12 }
 0x222   : > { %vm1379_vm6 = vcmp.gt.f32.partialorder %v1209_v13, 0.0  ;;  %v1383_v14 = vmul.f32 0.01, %v1209_v13  ;;  %v1216_v28 = vpack.c.bf16 %v1209_v13, %v1207_v9 }
 0x224   : > { %v2966_v16 = vsel %vm1379_vm6, %v1209_v13, %v1383_v14 }
 0x225   : > { %v1451_v17 = vmul.f32 %v2966_v16, %v2966_v16 }
 0x227   : > { %v1211_v18 = vpop.f32.mrf.mxu1  ;;  %1456 = vadd.xlane.f32.xlu1 %v1451_v17 }
 0x228   : > { %v1212_v19 = vadd.f32 %v2310_v6, %v1211_v18 }
 0x22a   : > { %vm1380_vm7 = vcmp.gt.f32.partialorder %v1212_v19, 0.0  ;;  %v1384_v21 = vmul.f32 0.01, %v1212_v19 }
 0x22c   : > { %v2970_v15 = vsel %vm1380_vm7, %v1212_v19, %v1384_v21 }
 0x22d   : > { %v1452_v22 = vmul.f32 %v2970_v15, %v2970_v15 }
 0x22f   : > { %v1213_v20 = vpop.f32.mrf.mxu1  ;;  %1458 = vadd.xlane.f32.xlu0 %v1452_v22 }
 0x230   : > { %v1214_v23 = vadd.f32 %v2310_v6, %v1213_v20 }
 0x232   : > { %v1217_v24 = vpack.c.bf16 %v1214_v23, %v1212_v19  ;;  %vm1381_vm8 = vcmp.gt.f32.partialorder %v1214_v23, 0.0  ;;  %v1385_v25 = vmul.f32 0.01, %v1214_v23 }
 0x234   : > { %1241 = vmatpush.bf16.msrb.mxu1 %v1217_v24  ;;  %v2974_v26 = vsel %vm1381_vm8, %v1214_v23, %v1385_v25 }
 0x235   : > { %v1453_v27 = vmul.f32 %v2974_v26, %v2974_v26 }
 0x237   : > { %1460 = vadd.xlane.f32.xlu0 %v1453_v27 }
 0x238   : > { %1242 = vmatpush.bf16.msrb.mxu1 %v1216_v28 }
 0x23b   : > { %2075 = vmatmul.msk.bf16.vlgmr.msrb.gmra.mxu1 %vm1228_vm9, %v2979_v29 }
 0x24b   : > { %2076 = vmatmul.msk.bf16.gmra.mxu1 %vm1228_vm9, %v2984_v30 }
 0x292   : > { %v1455_v35 = vpop.xlane.xlu1 %1454 }
 0x293   : > { %v1462_v41 = vadd.f32 1e-08, %v1455_v35 }
 0x295   : > { %vm1472_vm6 = vweird.f32 %v1462_v41 }
 0x29a   : > { %v1457_v38 = vpop.xlane.xlu1 %1456 }
 0x29b   : > { %v1463_v40 = vadd.f32 1e-08, %v1457_v38 }
 0x29d   : > { %2312 = vrsqrt.f32 %v1463_v40  ;;  %vm1482_vm3 = vweird.f32 %v1463_v40 }
 0x2a2   : > { %v1459_v42 = vpop.xlane.xlu0 %1458 }
 0x2a3   : > { %v1464_v44 = vadd.f32 1e-08, %v1459_v42  ;;  %v2313_v45 = vpop.eup %2312 }
 0x2a4   : > { %v1477_v51 = vmul.f32 %v2313_v45, %v1463_v40  ;;  %vm1483_vm1 = vweird.f32 %v2313_v45 }
 0x2a5   : > { %2314 = vrsqrt.f32 %v1464_v44  ;;  %vm1492_vm12 = vweird.f32 %v1464_v44  ;;  %vm1484_vm4 = vmor %vm1482_vm3, %vm1483_vm1 }
 0x2a6   : > { %2316 = vrsqrt.f32 %v1462_v41  ;;  %v1478_v55 = vmul.f32 %v2313_v45, %v1477_v51 }
 0x2a8   : > { %v1479_v60 = vmul.f32 0.5, %v1478_v55 }
 0x2aa   : > { %v1461_v46 = vpop.xlane.xlu0 %1460  ;;  %v1480_v3 = vsub.f32 1.5, %v1479_v60 }
 0x2ab   : > { %v2315_v47 = vpop.eup %2314  ;;  %v1465_v48 = vadd.f32 1e-08, %v1461_v46 }
 0x2ac   : > { %v2317_v49 = vpop.eup %2316  ;;  %v1487_v50 = vmul.f32 %v2315_v47, %v1464_v44  ;;  %vm1493_vm10 = vweird.f32 %v2315_v47  ;;  %v1481_v11 = vmul.f32 %v2313_v45, %v1480_v3 }
 0x2ad   : > { %2318 = vrsqrt.f32 %v1465_v48  ;;  %v1467_v53 = vmul.f32 %v2317_v49, %v1462_v41  ;;  %vm1494_vm14 = vmor %vm1492_vm12, %vm1493_vm10  ;;  %vm1502_vm15 = vweird.f32 %v1465_v48  ;;  %vm1473_vm2 = vweird.f32 %v2317_v49 }
 0x2ae   : > { %v1488_v52 = vmul.f32 %v2315_v47, %v1487_v50  ;;  %v1485_v22 = vsel %vm1484_vm4, %v2313_v45, %v1481_v11  ;;  %vm1474_vm7 = vmor %vm1472_vm6, %vm1473_vm2 }
 0x2af   : > { %v1468_v57 = vmul.f32 %v2317_v49, %v1467_v53  ;;  %v3002_v25 = vmul.f32 %v1485_v22, %v2966_v16 }
 0x2b0   : > { %v1489_v54 = vmul.f32 0.5, %v1488_v52 }
 0x2b1   : > { %v1469_v62 = vmul.f32 0.5, %v1468_v57 }
 0x2b2   : > { %v1490_v58 = vsub.f32 1.5, %v1489_v54 }
 0x2b3   : > { %v2319_v56 = vpop.eup %2318  ;;  %v1470_v5 = vsub.f32 1.5, %v1469_v62 }
 0x2b4   : > { %v1497_v59 = vmul.f32 %v2319_v56, %v1465_v48  ;;  %v1491_v63 = vmul.f32 %v2315_v47, %v1490_v58  ;;  %vm1503_vm13 = vweird.f32 %v2319_v56 }
 0x2b5   : > { %vm1504_vm0 = vmor %vm1502_vm15, %vm1503_vm13  ;;  %v1471_v17 = vmul.f32 %v2317_v49, %v1470_v5 }
 0x2b6   : > { %v1498_v61 = vmul.f32 %v2319_v56, %v1497_v59  ;;  %v1495_v7 = vsel %vm1494_vm14, %v2315_v47, %v1491_v63 }
 0x2b7   : > { %v2993_v13 = vmul.f32 %v1495_v7, %v2970_v15  ;;  %v1475_v24 = vsel %vm1474_vm7, %v2317_v49, %v1471_v17 }
 0x2b8   : > { %v1499_v0 = vmul.f32 0.5, %v1498_v61  ;;  %v1244_v1 = vpop.f32.mrf.mxu1 }
 0x2b9   : > { %vm1254_vm11 = vcmp.gt.f32.partialorder %v1244_v1, 0.0  ;;  %v1258_v2 = vmul.f32 0.01, %v1244_v1 }
 0x2ba   : > { %v1500_v4 = vsub.f32 1.5, %v1499_v0 }
 0x2bb   : > { %v2988_v6 = vsel %vm1254_vm11, %v1244_v1, %v1258_v2 }
 0x2bc   : > { %v1501_v9 = vmul.f32 %v2319_v56, %v1500_v4  ;;  %v1390_v8 = vmul.f32 %v2988_v6, %v2988_v6 }
 0x2be   : > { %v1505_v12 = vsel %vm1504_vm0, %v2319_v56, %v1501_v9  ;;  %1394 = vadd.xlane.f32.xlu2 %v1390_v8 }
 0x2bf   : > { %v2996_v14 = vmul.f32 %v1505_v12, %v2974_v26  ;;  %v3005_v26 = vmul.f32 %v1475_v24, %v2962_v10 }
 0x2c0   : > { %v1246_v18 = vpop.f32.mrf.mxu1 }
 0x2c1   : > { %vm1255_vm5 = vcmp.gt.f32.partialorder %v1246_v18, 0.0  ;;  %v1259_v19 = vmul.f32 0.01, %v1246_v18  ;;  %v1513_v21 = vpack.c.bf16 %v2996_v14, %v2993_v13  ;;  %v1512_v31 = vpack.c.bf16 %v3002_v25, %v3005_v26 }
 0x2c3   : > { %v1263_v20 = vsel %vm1255_vm5, %v1246_v18, %v1259_v19  ;;  %1520 = vmatpush.bf16.xpose.msrb.mxu0 %v1513_v21 }
 0x2c4   : > { %v1266_v15 = vpack.c.bf16 %v1263_v20, %v2988_v6  ;;  %v1391_v23 = vmul.f32 %v1263_v20, %v1263_v20 }
 0x2c6   : > { %1396 = vadd.xlane.f32.xlu2 %v1391_v23  ;;  %1344 = vmatmul.bf16.vlgmr.msra.gmra.mxu2 %v1266_v15 }
 0x2c8   : > { %v1249_v27 = vpop.f32.mrf.mxu1 }
 0x2c9   : > { %vm1256_vm8 = vcmp.gt.f32.partialorder %v1249_v27, 0.0  ;;  %v1260_v28 = vmul.f32 0.01, %v1249_v27 }
 0x2cb   : > { %v3009_v32 = vsel %vm1256_vm8, %v1249_v27, %v1260_v28  ;;  %1521 = vmatpush.bf16.xpose.msrb.mxu0 %v1512_v31 }
 0x2cc   : > { %v1392_v33 = vmul.f32 %v3009_v32, %v3009_v32 }
 0x2ce   : > { %1398 = vadd.xlane.f32.xlu0 %v1392_v33 }
 0x2d0   : > { %v1251_v16 = vpop.f32.mrf.mxu1 }
 0x2d1   : > { %vm1257_vm10 = vcmp.gt.f32.partialorder %v1251_v16, 0.0  ;;  %v1261_v34 = vmul.f32 0.01, %v1251_v16 }
 0x2d3   : > { %v3013_v35 = vsel %vm1257_vm10, %v1251_v16, %v1261_v34 }
 0x2d4   : > { %v1393_v10 = vmul.f32 %v3013_v35, %v3013_v35  ;;  %v1267_v36 = vpack.c.bf16 %v3013_v35, %v3009_v32 }
 0x2d6   : > { %1400 = vadd.xlane.f32.xlu1 %v1393_v10  ;;  %1349 = vmatmul.bf16.gmra.mxu2 %v1267_v36 }
 0x331   : > { %v1395_v37 = vpop.xlane.xlu2 %1394 }
 0x332   : > { %v1402_v38 = vadd.f32 1e-08, %v1395_v37 }
 0x334   : > { %2320 = vrsqrt.f32 %v1402_v38  ;;  %vm1412_vm12 = vweird.f32 %v1402_v38 }
 0x339   : > { %v1397_v39 = vpop.xlane.xlu2 %1396 }
 0x33a   : > { %v2321_v40 = vpop.eup %2320  ;;  %v1403_v41 = vadd.f32 1e-08, %v1397_v39 }
 0x33b   : > { %v1407_v42 = vmul.f32 %v2321_v40, %v1402_v38  ;;  %vm1413_vm11 = vweird.f32 %v2321_v40 }
 0x33c   : > { %2322 = vrsqrt.f32 %v1403_v41  ;;  %vm1414_vm14 = vmor %vm1412_vm12, %vm1413_vm11  ;;  %vm1422_vm15 = vweird.f32 %v1403_v41 }
 0x33d   : > { %v1408_v43 = vmul.f32 %v2321_v40, %v1407_v42 }
 0x33f   : > { %v1409_v44 = vmul.f32 0.5, %v1408_v43 }
 0x341   : > { %v1399_v45 = vpop.xlane.xlu0 %1398  ;;  %v1410_v48 = vsub.f32 1.5, %v1409_v44 }
 0x342   : > { %v2323_v46 = vpop.eup %2322  ;;  %v1404_v47 = vadd.f32 1e-08, %v1399_v45 }
 0x343   : > { %v1417_v49 = vmul.f32 %v2323_v46, %v1403_v41  ;;  %v1411_v51 = vmul.f32 %v2321_v40, %v1410_v48  ;;  %vm1423_vm13 = vweird.f32 %v2323_v46 }
 0x344   : > { %2324 = vrsqrt.f32 %v1404_v47  ;;  %vm1424_vm0 = vmor %vm1422_vm15, %vm1423_vm13  ;;  %vm1432_vm2 = vweird.f32 %v1404_v47 }
 0x345   : > { %v1418_v50 = vmul.f32 %v2323_v46, %v1417_v49  ;;  %v1415_v58 = vsel %vm1414_vm14, %v2321_v40, %v1411_v51 }
 0x346   : > { %v3020_v63 = vmul.f32 %v1415_v58, %v2988_v6 }
 0x347   : > { %v1419_v52 = vmul.f32 0.5, %v1418_v50 }
 0x349   : > { %v1420_v53 = vsub.f32 1.5, %v1419_v52  ;;  %v1345_v54 = vpop.f32.mrf.mxu2  ;;  %v1401_v55 = vpop.xlane.xlu1 %1400 }
 0x34a   : > { %v2325_v56 = vpop.eup %2324  ;;  %v1405_v57 = vadd.f32 1e-08, %v1401_v55 }
 0x34b   : > { %v1421_v59 = vmul.f32 %v2323_v46, %v1420_v53  ;;  %v1427_v60 = vmul.f32 %v2325_v56, %v1404_v47  ;;  %vm1433_vm1 = vweird.f32 %v2325_v56 }
 0x34c   : > { %2326 = vrsqrt.f32 %v1405_v57  ;;  %vm1434_vm4 = vmor %vm1432_vm2, %vm1433_vm1  ;;  %vm1442_vm5 = vweird.f32 %v1405_v57 }
 0x34d   : > { %v1425_v61 = vsel %vm1424_vm0, %v2323_v46, %v1421_v59  ;;  %v1428_v62 = vmul.f32 %v2325_v56, %v1427_v60  ;;  %v1585_v59 = vmul.f32 %v3005_v26, %v3020_v63 }
 0x34e   : > { %v3022_v0 = vmul.f32 %v1425_v61, %v1263_v20  ;;  %v2311_v20 = vld [vmem:[%s3127_s9] ss:$0 sm:$0xff] }
 0x34f   : > { %v1429_v1 = vmul.f32 0.5, %v1428_v62  ;;  %v1346_v33 = vadd.f32 %v2311_v20, %v1345_v54 }
 0x350   : > { %v1510_v2 = vpack.c.bf16 %v3022_v0, %v3020_v63 }
 0x351   : > { %v1347_v3 = vpop.f32.mrf.mxu2  ;;  %v1430_v5 = vsub.f32 1.5, %v1429_v1  ;;  %v1586_v1 = vmul.f32 %v3002_v25, %v3022_v0 }
 0x352   : > { %v2327_v4 = vpop.eup %2326  ;;  %1522 = vmatmul.bf16.vlgmr.msrb.gmra.mxu0 %v1510_v2  ;;  %v1348_v28 = vadd.f32 %v2311_v20, %v1347_v3 }
 0x353   : > { %v1437_v7 = vmul.f32 %v2327_v4, %v1405_v57  ;;  %v1431_v11 = vmul.f32 %v2325_v56, %v1430_v5  ;;  %vm1443_vm3 = vweird.f32 %v2327_v4 }
 0x354   : > { %vm1444_vm6 = vmor %vm1442_vm5, %vm1443_vm3  ;;  %v1355_v16 = vpack.c.bf16 %v1348_v28, %v1346_v33 }
 0x355   : > { %v1438_v9 = vmul.f32 %v2327_v4, %v1437_v7  ;;  %v1435_v17 = vsel %vm1434_vm4, %v2325_v56, %v1431_v11 }
 0x356   : > { %v3027_v21 = vmul.f32 %v1435_v17, %v3009_v32 }
 0x357   : > { %v1439_v8 = vmul.f32 0.5, %v1438_v9 }
 0x358   : > { %v1587_v26 = vmul.f32 %v2993_v13, %v3027_v21 }
 0x359   : > { %v1440_v12 = vsub.f32 1.5, %v1439_v8  ;;  %v1350_v6 = vpop.f32.mrf.mxu2 }
 0x35a   : > { %v1351_v24 = vadd.f32 %v2311_v20, %v1350_v6 }
 0x35b   : > { %v1441_v18 = vmul.f32 %v2327_v4, %v1440_v12 }
 0x35d   : > { %v1445_v19 = vsel %vm1444_vm6, %v2327_v4, %v1441_v18 }
 0x35e   : > { %v1449_v22 = vmul.f32 %v1445_v19, %v3013_v35 }
 0x360   : > { %v1511_v15 = vpack.c.bf16 %v1449_v22, %v3027_v21  ;;  %v1588_v62 = vmul.f32 %v2996_v14, %v1449_v22 }
 0x361   : > { %v1352_v23 = vpop.f32.mrf.mxu2 }
 0x362   : > { %v1353_v27 = vadd.f32 %v2311_v20, %v1352_v23  ;;  %1527 = vmatmul.bf16.gmra.mxu0 %v1511_v15 }
 0x364   : > { %v1356_v31 = vpack.c.bf16 %v1353_v27, %v1351_v24 }
 0x366   : > { %1363 = vmatpush.bf16.msra.mxu3 %v1356_v31 }
 0x36a   : > { %1364 = vmatpush.bf16.msra.mxu3 %v1355_v16 }
 0x36d   : > { %2109 = vmatmul.msk.bf16.vlgmr.msra.gmra.mxu3 %vm1228_vm9, %v2979_v29 }
 0x37d   : > { %2110 = vmatmul.msk.bf16.gmra.mxu3 %vm1228_vm9, %v2984_v30 }
 0x3cf   : > { %v1523_v32 = vpop.f32.mrf.mxu0 }
 0x3d0   : > { %v1533_v34 = vmul.f32 2.0, %v1523_v32 }
 0x3d2   : > { %v1537_v35 = vsel %vm1228_vm9, %v1533_v34, -inf }
 0x3d3   : > { %1538 = vmax.xlane.f32.xlu2 %v1537_v35 }
 0x3d7   : > { %v1525_v10 = vpop.f32.mrf.mxu0 }
 0x3d8   : > { %v1534_v36 = vmul.f32 2.0, %v1525_v10 }
 0x3da   : > { %v1540_v37 = vsel %vm1228_vm9, %v1534_v36, -inf }
 0x3db   : > { %1541 = vmax.xlane.f32.xlu0 %v1540_v37 }
 0x3df   : > { %v1528_v38 = vpop.f32.mrf.mxu0 }
 0x3e0   : > { %v1535_v39 = vmul.f32 2.0, %v1528_v38 }
 0x3e2   : > { %v1543_v40 = vsel %vm1228_vm9, %v1535_v39, -inf }
 0x3e3   : > { %1544 = vmax.xlane.f32.xlu1 %v1543_v40 }
 0x3e7   : > { %v1530_v41 = vpop.f32.mrf.mxu0 }
 0x3e8   : > { %v1536_v29 = vmul.f32 2.0, %v1530_v41 }
 0x3ea   : > { %v1546_v42 = vsel %vm1228_vm9, %v1536_v29, -inf }
 0x3eb   : > { %1547 = vmax.xlane.f32.xlu2 %v1546_v42 }
 0x3f0   : > { %v1366_v63 = vpop.f32.mrf.mxu3 }
 0x3f8   : > { %v1368_v14 = vpop.f32.mrf.mxu3 }
 0x3f9   : > { %v2186_v25 = vpack.c.bf16 %v1368_v14, %v1366_v63 }
 0x3fb   : > { %2187 = vst [vmem:[%s532_s3] sm:$0xff] %v2186_v25  }
 0x446   : > { %v3042_v30 = vpop.xlane.xlu2 %1538 }
 0x447   : > { %v1549_v43 = vsub.f32 %v1533_v34, %v3042_v30 }
 0x449   : > { %v1553_v44 = vmul.f32 1.442695, %v1549_v43 }
 0x44b   : > { %2328 = vpow2.f32 %v1553_v44 }
 0x44e   : > { %v3045_v45 = vpop.xlane.xlu0 %1541 }
 0x44f   : > { %v1550_v46 = vsub.f32 %v1534_v36, %v3045_v45 }
 0x451   : > { %v2329_v47 = vpop.eup %2328  ;;  %v1555_v48 = vmul.f32 1.442695, %v1550_v46 }
 0x452   : > { %v1561_v49 = vsel %vm1228_vm9, %v2329_v47, 0.0 }
 0x453   : > { %2330 = vpow2.f32 %v1555_v48  ;;  %1562 = vadd.xlane.f32.xlu0 %v1561_v49 }
 0x456   : > { %v3049_v50 = vpop.xlane.xlu1 %1544 }
 0x457   : > { %v1551_v51 = vsub.f32 %v1535_v39, %v3049_v50 }
 0x459   : > { %v2331_v52 = vpop.eup %2330  ;;  %v1557_v53 = vmul.f32 1.442695, %v1551_v51 }
 0x45a   : > { %v1564_v54 = vsel %vm1228_vm9, %v2331_v52, 0.0 }
 0x45b   : > { %2332 = vpow2.f32 %v1557_v53  ;;  %1565 = vadd.xlane.f32.xlu1 %v1564_v54 }
 0x45e   : > { %v3053_v55 = vpop.xlane.xlu2 %1547 }
 0x45f   : > { %v1552_v56 = vsub.f32 %v1536_v29, %v3053_v55 }
 0x461   : > { %v2333_v57 = vpop.eup %2332  ;;  %v1559_v58 = vmul.f32 1.442695, %v1552_v56 }
 0x462   : > { %v1567_v60 = vsel %vm1228_vm9, %v2333_v57, 0.0 }
 0x463   : > { %2334 = vpow2.f32 %v1559_v58  ;;  %1589 = vadd.xlane.f32.xlu1 %v1585_v59  ;;  %1568 = vadd.xlane.f32.xlu2 %v1567_v60 }
 0x469   : > { %v2335_v61 = vpop.eup %2334 }
 0x46a   : > { %v1570_v2 = vsel %vm1228_vm9, %v2335_v61, 0.0 }
 0x46b   : > { %1595 = vadd.xlane.f32.xlu1 %v1588_v62  ;;  %1591 = vadd.xlane.f32.xlu2 %v1586_v1 }
 0x46c   : > { %1571 = vadd.xlane.f32.xlu0 %v1570_v2 }
 0x474   : > { %1593 = vadd.xlane.f32.xlu0 %v1587_v26 }
 0x475   : > { %2581 = shalt.err (!%p2578_p8)
}
 0x476   : > { %s2679_s15 = smov 64   ;;  %s2680_s12 = smov 4   ;;  %v1371_v13 = vpop.f32.mrf.mxu3 }
 0x477   : > { %2220 = dma.vmem_to_hbm [thread:$0]  (%p2839_p13), %s1634_s0, 128, %s1636_s23, %s1617_s28, %s2679_s15, %s2679_s15, %s2680_s12  }
 0x478   : > { %s1647_s27 = scalar_lea.hbm %s3129_s11, %s2765_s24  ;;  %s538_s8 = scalar_lea.vmem [#allocation15], %s2899_s4 }
 0x479   : > { %s1649_s16 = sshll.u32 %s538_s8, 4  ;;  %s1651_s3 = sshll.u32 %s1647_s27, 4  ;;  %s1650_s16 = int_to_ptr.vmem [resolvable:$true] %s1649_s16  ;;  %s1652_s3 = int_to_ptr.hbm [resolvable:$true] %s1651_s3 }
 0x47a   : > { %s1622_s0 = scalar_lea.sflag [#allocation16], %s2899_s4  ;;  %s2596_s23 = sshra.s32 %s1652_s3, 4  ;;  %s2597_s23 = int_to_ptr.hbm [resolvable:$true] %s2596_s23 }
 0x47b   : > { %s2598_s28 = scalar_lea.hbm %s2597_s23, 1  ;;  %s2602_s24 = scalar_lea.hbm %s3129_s11, 3 }
 0x47c   : > { %p2599_p9 = scmp.ne.s32.totalorder %s2597_s23, %s2598_s28  ;;  %p2603_p0 = scmp.lt.s32.totalorder %s2597_s23, %s3129_s11 }
 0x47d   : > { %p2604_p2 = scmp.lt.s32.totalorder %s2602_s24, %s2598_s28 }
 0x47e   : > { %v1372_v5 = vpop.f32.mrf.mxu3  ;;  %p2600_p10 = pnand %p2599_p9, %p2839_p13 }
 0x47f   : > { %p2605_p1 = por %p2604_p2, %p2603_p0 }
 0x480   : > { %p2601_p11 = pneg %p2600_p10 }
 0x482   : > { %p2606_p3 = pnand %p2605_p1, %p2601_p11 }
 0x4c6   : > { %v1563_v3 = vpop.xlane.xlu0 %1562 }
 0x4ce   : > { %v1566_v0 = vpop.xlane.xlu1 %1565 }
 0x4cf   : > { %2336 = vlog2.f32 %v1566_v0 }
 0x4d0   : > { %2338 = vlog2.f32 %v1563_v3 }
 0x4d5   : > { %v2337_v9 = vpop.eup %2336 }
 0x4d6   : > { %v1569_v4 = vpop.xlane.xlu2 %1568  ;;  %v1590_v7 = vpop.xlane.xlu1 %1589  ;;  %v1576_v6 = vmul.f32 0.6931472, %v2337_v9 }
 0x4d7   : > { %2340 = vlog2.f32 %v1569_v4  ;;  %v2339_v8 = vpop.eup %2338  ;;  %v1597_v21 = vmul.f32 2.0, %v1590_v7 }
 0x4d8   : > { %v1574_v18 = vmul.f32 0.6931472, %v2339_v8  ;;  %v1582_v20 = vadd.f32 %v1576_v6, %v3045_v45 }
 0x4da   : > { %v1581_v23 = vadd.f32 %v1574_v18, %v3042_v30 }
 0x4dc   : > { %v1601_v33 = vsub.f32 %v1581_v23, %v1597_v21 }
 0x4dd   : > { %v2341_v17 = vpop.eup %2340 }
 0x4de   : > { %v1592_v12 = vpop.xlane.xlu2 %1591  ;;  %v1578_v22 = vmul.f32 0.6931472, %v2341_v17  ;;  %v1596_v24 = vpop.xlane.xlu1 %1595 }
 0x4df   : > { %v1572_v11 = vpop.xlane.xlu0 %1571  ;;  %v1598_v19 = vmul.f32 2.0, %v1592_v12  ;;  %v1600_v34 = vmul.f32 2.0, %v1596_v24 }
 0x4e0   : > { %2342 = vlog2.f32 %v1572_v11  ;;  %v1583_v16 = vadd.f32 %v1578_v22, %v3049_v50 }
 0x4e1   : > { %v1602_v27 = vsub.f32 %v1582_v20, %v1598_v19 }
 0x4e3   : > { %v1605_v10 = vadd.f32 %v1602_v27, %v1601_v33 }
 0x4e6   : > { %v2343_v15 = vpop.eup %2342 }
 0x4e7   : > { %v1580_v28 = vmul.f32 0.6931472, %v2343_v15  ;;  %v1594_v31 = vpop.xlane.xlu0 %1593 }
 0x4e8   : > { %v1599_v32 = vmul.f32 2.0, %v1594_v31 }
 0x4e9   : > { %v1584_v35 = vadd.f32 %v1580_v28, %v3053_v55 }
 0x4ea   : > { %v1603_v36 = vsub.f32 %v1583_v16, %v1599_v32 }
 0x4eb   : > { %v1604_v37 = vsub.f32 %v1584_v35, %v1600_v34 }
 0x4ec   : > { %v1606_v38 = vadd.f32 %v1605_v10, %v1603_v36 }
 0x4ee   : > { %v1607_v39 = vadd.f32 %v1606_v38, %v1604_v37 }
 0x4f0   : > { %v1608_v40 = vrot.slane %v1607_v39, 4 }
 0x4f2   : > { %v1609_v41 = vadd.f32 %v1608_v40, %v1607_v39 }
 0x4f4   : > { %v1610_v29 = vrot.slane %v1609_v41, 2 }
 0x4f6   : > { %v1611_v42 = vadd.f32 %v1610_v29, %v1609_v41 }
 0x4f8   : > { %v1612_v30 = vrot.slane %v1611_v42, 1 }
 0x4fa   : > { %v1613_v43 = vadd.f32 %v1612_v30, %v1611_v42 }
 0x4fc   : > { %v1614_v44 = vmul.f32 0.03125, %v1613_v43 }
 0x4fe   : > { %1615 = vst [vmem:[%s538_s8] sm:$0x1] %v1614_v44 }
 0x4ff   : > { %2609 = shalt.err (!%p2606_p3)
}
 0x500   : > { %2221 = dma.vmem_to_hbm [thread:$0]  (%p2839_p13), %s1650_s16, 16, %s1652_s3, %s1622_s0  }
 0x501 PF: > { %p2265_p12 = scmp.ge.s32.totalorder %s2668_s20, 2  ;;  %s1663_s4 = sand.u32 1, %s2656_s17  }
 0x502   : > { %s1664_s21 = scalar_lea.sflag [#allocation4], %s1663_s4 }
 0x503   : > { %p2248_p5 = pnand %p2265_p12, %p2845_p4 }
 0x505   : > { %p2249_p7 = pneg %p2248_p5 }
 0x507   : > { %2647 = dma.done.wait (%p2249_p7), %s1664_s21, 128  }
 0x508   : > { %2649 = vsyncadd (%p2249_p7), %s1664_s21, 4294967168  ;;  %s1674_s19 = scalar_lea.sflag [#allocation16], %s1663_s4 }
 0x509   : > { %2651 = dma.done.wait (%p2249_p7), %s1674_s19, 16  }
 0x50a   : > { %2653 = vsyncadd (%p2249_p7), %s1674_s19, 4294967280  ;;  %s3161_s20 = sld [smem:[#allocation25_spill]]  ;;  %s3164_s17 = smov %s2660_s18 }
 0x50b   : > { %s3162_s13 = sld [smem:[#allocation24_spill]] }
 0x50c   : > { %s3163_s19 = sld [smem:[#allocation26_spill]] }
 0x510   : > { %p33_p13 = scmp.ge.s32.totalorder %s3161_s20, 5  }
 0x511   : > { %s3165_s18 = smov %s3162_s13 }
 0x512   :  { %35 = sbr.rel (!%p33_p13) target bundleno = 18 (0x12), region = 155 }
 0x517   :  { %1679 = vsyncpa [#allocation3], 1 }
 0x518   :  { %1681 = vsyncpa [#allocation3 + $0x1], 1 }
 0x519   :  { %1682 = vsyncpa [#allocation6], 1 }
 0x51a   :  { %1684 = vsyncpa [#allocation6 + $0x1], 1 }
 0x51b   :  { %1685 = vsyncpa [#allocation9], 1 }
 0x51c   :  { %1686 = vsyncpa [#allocation12], 1 }
 0x51d   :  { %1687 = vsyncpa [#allocation4], 1 }
 0x51e   :  { %1689 = vsyncpa [#allocation4 + $0x1], 1 }
 0x51f   :  { %1690 = vsyncpa [#allocation16], 1 }
 0x520   :  { %1692 = vsyncpa [#allocation16 + $0x1], 1 }

</bundles_post_ra>
